<compile_context>
chip_gen: v5e
topology: v5e:2x2
jax: 0.10.0
libtpu: 0.0.40
codegen_flags: <defaults>
</compile_context>

<pallas_src>
import math

import jax
import jax.numpy as jnp
from jax.experimental import pallas as pl
from jax.experimental.pallas import tpu as pltpu

IN_FEATURES = 16
OUT_FEATURES = 32
N_HEADS = 2


def _full_spec(shape):
    zeros = (0,) * len(shape)
    return pl.BlockSpec(shape, lambda i: zeros)


def _make_rgat_kernel(canonical_etypes, ntypes, out_dtypes, counts, offsets,
                      n_heads, out_features):
    """Kernel body: fused per-node-type projections + all edge types + epilogue."""
    n_nty = len(ntypes)
    n_ety = len(canonical_etypes)
    H, F = n_heads, out_features

    def kernel(*refs):
        f32 = jnp.float32
        # ---- one fused projection matmul per node type (q | k | value cols) --
        proj = {}
        for i, nty in enumerate(ntypes):
            x = refs[3 * i][...]          # [N, in]
            w = refs[3 * i + 1][...]      # [in, C_nty]
            b = refs[3 * i + 2][...]      # [1, C_nty]
            proj[nty] = jnp.dot(x, w, preferred_element_type=f32) + b
        base = 3 * n_nty
        bias_refs = {ety: refs[base + j]
                     for j, (_, ety, _) in enumerate(canonical_etypes)}
        out_base = base + n_ety
        out_refs = {dty: refs[out_base + i] for i, dty in enumerate(out_dtypes)}

        sums = {}
        for (sty, ety, dty) in canonical_etypes:
            p_src, p_dst = proj[sty], proj[dty]
            qo = offsets[(ety, "q")]
            ko = offsets[(ety, "k")]
            vo = offsets[(ety, "v")]
            q = p_dst[:, qo:qo + H]                 # [Nd, H]
            k = p_src[:, ko:ko + H]                 # [Ns, H]
            hsrc = p_src[:, vo:vo + H * F]          # [Ns, H*F]

            # u_add_v for all heads at once: e[d, h, s] = q[d, h] + k[s, h]
            e = q[:, :, None] + k.T[None, :, :]                 # [Nd, H, Ns]
            coeff = jnp.where(e > 0, e, f32(0.2) * e)           # LeakyReLU(0.2)
            masked = coeff + bias_refs[ety][...][:, None, :]    # additive adj bias
            m = jnp.max(masked, axis=-1, keepdims=True)         # [Nd, H, 1]
            p = jnp.exp(masked - m)
            denom = jnp.sum(p, axis=-1, keepdims=True)
            # zero-in-degree guard: all-masked rows have m == -1e30
            inv = jnp.where(m > f32(-1e29),
                            pl.reciprocal(denom, approx=True), f32(0.0))
            attn = p * inv                                      # [Nd, H, Ns]

            nd = q.shape[0]
            acc = jnp.zeros((nd, F), f32)
            # u_mul_e + aggregate_sum == attention-weighted matmul per head.
            # TODO(synk): at real sizes fuse into one [Nd,H*Ns] @ [H*Ns,F] matmul.
            for h in range(H):
                acc = acc + jnp.dot(attn[:, h, :], hsrc[:, h * F:(h + 1) * F],
                                    preferred_element_type=f32)
            sums[dty] = acc if dty not in sums else sums[dty] + acc

        # head-mean + HeteroGraphConv average + ELU (Dropout is identity in eval).
        for dty, out_ref in out_refs.items():
            s = sums[dty] * f32(1.0 / (H * counts[dty]))
            out_ref[...] = jnp.where(s > 0, s, jnp.exp(jnp.minimum(s, 0.0)) - 1.0)

    return kernel


def rgat_forward(canonical_etypes, params, adjs, xs, *, n_heads, out_features):
    ntypes = sorted(xs.keys())
    out_dtypes = sorted({d for (_, _, d) in canonical_etypes})
    counts = {}
    for (_, _, d) in canonical_etypes:
        counts[d] = counts.get(d, 0) + 1

    H, F = n_heads, out_features
    f32 = jnp.float32

    # ---- wrapper-side param prep: fold linear_v into q/k, concat per node type
    col_blocks = {nty: [] for nty in ntypes}
    bias_blocks = {nty: [] for nty in ntypes}
    offsets = {}

    def _width(nty):
        return sum(int(w.shape[1]) for w in col_blocks[nty])

    # pass 1: value columns first (wide, nicely aligned at the front of the slab)
    for (sty, ety, dty) in canonical_etypes:
        wv, bv, wq, bq, wk, bk = params[ety]
        offsets[(ety, "v")] = _width(sty)
        col_blocks[sty].append(wv.astype(f32))          # [in, H*F]
        bias_blocks[sty].append(bv.astype(f32))         # [1, H*F]
    # pass 2: folded q / k columns (linear_v algebraically folded in)
    for (sty, ety, dty) in canonical_etypes:
        wv, bv, wq, bq, wk, bk = params[ety]
        offsets[(ety, "q")] = _width(dty)
        col_blocks[dty].append((wv @ wq).astype(f32))        # [in, H]
        bias_blocks[dty].append((bv @ wq + bq).astype(f32))  # [1, H]
        offsets[(ety, "k")] = _width(sty)
        col_blocks[sty].append((wv @ wk).astype(f32))        # [in, H]
        bias_blocks[sty].append((bv @ wk + bk).astype(f32))  # [1, H]

    args = []
    for nty in ntypes:
        assert col_blocks[nty], f"node type {nty} is never used by an edge type"
        args.append(xs[nty].astype(f32))                         # [N, in]
        args.append(jnp.concatenate(col_blocks[nty], axis=1))    # [in, C_nty]
        args.append(jnp.concatenate(bias_blocks[nty], axis=1))   # [1, C_nty]
    for (sty, ety, dty) in canonical_etypes:
        # additive softmax mask precomputed wrapper-side (finite sentinel).
        # TODO(synk): store as bf16/int8 at real graph sizes (HBM-bytes dominated).
        args.append(jnp.where(adjs[ety] > 0, f32(0.0), f32(-1e30)))

    kernel = _make_rgat_kernel(canonical_etypes, ntypes, out_dtypes, counts,
                               offsets, H, F)
    out_shapes = tuple(jax.ShapeDtypeStruct((xs[d].shape[0], F), f32)
                       for d in out_dtypes)

    outs = pl.pallas_call(
        kernel,
        grid=(1,),
        in_specs=[_full_spec(a.shape) for a in args],
        out_specs=tuple(_full_spec(s.shape) for s in out_shapes),
        out_shape=out_shapes,
        compiler_params=pltpu.CompilerParams(dimension_semantics=("arbitrary",)),
    )(*args)
    if not isinstance(outs, (tuple, list)):
        outs = (outs,)
    return {d: o for d, o in zip(out_dtypes, outs)}


def init_gat_params(key, in_features, out_features, n_heads):
    hf = n_heads * out_features
    ks = jax.random.split(key, 6)

    def linear(kw, kb, fan_in, fan_out):      # nn.Linear-style uniform init
        bound = 1.0 / math.sqrt(fan_in)
        w = jax.random.uniform(kw, (fan_in, fan_out), jnp.float32, -bound, bound)
        b = jax.random.uniform(kb, (1, fan_out), jnp.float32, -bound, bound)
        return w, b

    wv, bv = linear(ks[0], ks[1], in_features, hf)   # linear_v
    wq, bq = linear(ks[2], ks[3], hf, n_heads)       # linear_q
    wk, bk = linear(ks[4], ks[5], hf, n_heads)       # linear_k
    return (wv, bv, wq, bq, wk, bk)


def rgat_reference(canonical_etypes, params, adjs, xs, *, n_heads, out_features):
    """Plain-JAX (unfused) reference mirroring the PyTorch module semantics."""
    H, F = n_heads, out_features
    counts, sums = {}, {}
    for (sty, ety, dty) in canonical_etypes:
        wv, bv, wq, bq, wk, bk = params[ety]
        h_src = xs[sty] @ wv + bv
        h_dst = xs[dty] @ wv + bv
        q = h_dst @ wq + bq
        k = h_src @ wk + bk
        adj = adjs[ety]
        res = jnp.zeros((xs[dty].shape[0], F), jnp.float32)
        for h in range(H):
            e = q[:, h:h + 1] + k[:, h][None, :]
            coeff = jnp.where(e > 0, e, 0.2 * e)
            masked = jnp.where(adj > 0, coeff, -1e30)
            m = jnp.max(masked, axis=-1, keepdims=True)
            p = jnp.exp(masked - m) * adj
            denom = jnp.maximum(jnp.sum(p, axis=-1, keepdims=True), 1e-30)
            res = res + (p / denom) @ h_src[:, h * F:(h + 1) * F]
        res = res / H
        counts[dty] = counts.get(dty, 0) + 1
        sums[dty] = res if dty not in sums else sums[dty] + res
    outs = {}
    for dty, s in sums.items():
        s = s / counts[dty]
        outs[dty] = jnp.where(s > 0, s, jnp.exp(jnp.minimum(s, 0.0)) - 1.0)
    return outs


if __name__ == "__main__":
    key = jax.random.PRNGKey(0)
    n_a, n_b = 8, 8
    canonical_etypes = [("A", "ab", "B"), ("B", "bb", "B"), ("B", "ba", "A")]

    k_xa, k_xb, k_ab, k_bb, k_ba, k_p = jax.random.split(key, 6)
    xs = {
        "A": jax.random.normal(k_xa, (n_a, IN_FEATURES), jnp.float32),
        "B": jax.random.normal(k_xb, (n_b, IN_FEATURES), jnp.float32),
    }
    adjs = {  # dense adjacency masks, shape [num_dst, num_src]
        "ab": jax.random.bernoulli(k_ab, 0.5, (n_b, n_a)).astype(jnp.float32),
        "bb": jax.random.bernoulli(k_bb, 0.5, (n_b, n_b)).astype(jnp.float32),
        "ba": jax.random.bernoulli(k_ba, 0.5, (n_a, n_b)).astype(jnp.float32),
    }
    pkeys = jax.random.split(k_p, len(canonical_etypes))
    params = {ety: init_gat_params(pk, IN_FEATURES, OUT_FEATURES, N_HEADS)
              for (_, ety, _), pk in zip(canonical_etypes, pkeys)}

    outs = rgat_forward(canonical_etypes, params, adjs, xs,
                        n_heads=N_HEADS, out_features=OUT_FEATURES)
    refs = rgat_reference(canonical_etypes, params, adjs, xs,
                          n_heads=N_HEADS, out_features=OUT_FEATURES)
    for dty in sorted(outs):
        jax.block_until_ready(outs[dty])
        assert outs[dty].shape == (xs[dty].shape[0], OUT_FEATURES)
        assert bool(jnp.all(jnp.isfinite(outs[dty])))
        max_err = float(jnp.max(jnp.abs(outs[dty] - refs[dty])))
        assert max_err < 5e-2, f"mismatch for {dty}: max_err={max_err}"
    print("KERNEL_OK")
</pallas_src>

<mosaic_0001>
module attributes {stable_mosaic.version = 11 : i64} {
  func.func @kernel(%arg0: i32, %arg1: memref<8x16xf32, #tpu.memory_space<vmem>>, %arg2: memref<16x68xf32, #tpu.memory_space<vmem>>, %arg3: memref<1x68xf32, #tpu.memory_space<vmem>>, %arg4: memref<8x16xf32, #tpu.memory_space<vmem>>, %arg5: memref<16x136xf32, #tpu.memory_space<vmem>>, %arg6: memref<1x136xf32, #tpu.memory_space<vmem>>, %arg7: memref<8x8xf32, #tpu.memory_space<vmem>>, %arg8: memref<8x8xf32, #tpu.memory_space<vmem>>, %arg9: memref<8x8xf32, #tpu.memory_space<vmem>>, %arg10: memref<8x32xf32, #tpu.memory_space<vmem>>, %arg11: memref<8x32xf32, #tpu.memory_space<vmem>>) attributes {dimension_semantics = [#tpu.dimension_semantics<arbitrary>], iteration_bounds = array<i64: 1>, scalar_prefetch = 0 : i64, scratch_operands = 0 : i64, tpu.core_type = #tpu.core_type<tc>, window_params = [{pipeline_mode = #tpu.pipeline_mode<synchronous>, transform_indices = @transform_0, window_bounds = array<i64: 8, 16>}, {pipeline_mode = #tpu.pipeline_mode<synchronous>, transform_indices = @transform_1, window_bounds = array<i64: 16, 68>}, {pipeline_mode = #tpu.pipeline_mode<synchronous>, transform_indices = @transform_2, window_bounds = array<i64: 1, 68>}, {pipeline_mode = #tpu.pipeline_mode<synchronous>, transform_indices = @transform_3, window_bounds = array<i64: 8, 16>}, {pipeline_mode = #tpu.pipeline_mode<synchronous>, transform_indices = @transform_4, window_bounds = array<i64: 16, 136>}, {pipeline_mode = #tpu.pipeline_mode<synchronous>, transform_indices = @transform_5, window_bounds = array<i64: 1, 136>}, {pipeline_mode = #tpu.pipeline_mode<synchronous>, transform_indices = @transform_6, window_bounds = array<i64: 8, 8>}, {pipeline_mode = #tpu.pipeline_mode<synchronous>, transform_indices = @transform_7, window_bounds = array<i64: 8, 8>}, {pipeline_mode = #tpu.pipeline_mode<synchronous>, transform_indices = @transform_8, window_bounds = array<i64: 8, 8>}, {pipeline_mode = #tpu.pipeline_mode<synchronous>, transform_indices = @transform_9, window_bounds = array<i64: 8, 32>}, {pipeline_mode = #tpu.pipeline_mode<synchronous>, transform_indices = @transform_10, window_bounds = array<i64: 8, 32>}]} {
    %c0 = arith.constant 0 : index
    %c0_0 = arith.constant 0 : index
    %0 = vector.load %arg1[%c0, %c0_0] : memref<8x16xf32, #tpu.memory_space<vmem>>, vector<8x16xf32>
    %c0_1 = arith.constant 0 : index
    %c0_2 = arith.constant 0 : index
    %1 = vector.load %arg2[%c0_1, %c0_2] : memref<16x68xf32, #tpu.memory_space<vmem>>, vector<16x68xf32>
    %c0_3 = arith.constant 0 : index
    %c0_4 = arith.constant 0 : index
    %2 = vector.load %arg3[%c0_3, %c0_4] : memref<1x68xf32, #tpu.memory_space<vmem>>, vector<1x68xf32>
    %cst = arith.constant dense<0.000000e+00> : vector<8x68xf32>
    %3 = tpu.matmul %0, %1, %cst {dimension_numbers = #tpu.dot_dimension_numbers<[1], [0], [0], [1], [0, 0, 1, 1], [], []>} : vector<8x16xf32>, vector<16x68xf32>, vector<8x68xf32> -> vector<8x68xf32>
    %4 = vector.broadcast %2 : vector<1x68xf32> to vector<8x68xf32>
    %5 = arith.addf %3, %4 : vector<8x68xf32>
    %c0_5 = arith.constant 0 : index
    %c0_6 = arith.constant 0 : index
    %6 = vector.load %arg4[%c0_5, %c0_6] : memref<8x16xf32, #tpu.memory_space<vmem>>, vector<8x16xf32>
    %c0_7 = arith.constant 0 : index
    %c0_8 = arith.constant 0 : index
    %7 = vector.load %arg5[%c0_7, %c0_8] : memref<16x136xf32, #tpu.memory_space<vmem>>, vector<16x136xf32>
    %c0_9 = arith.constant 0 : index
    %c0_10 = arith.constant 0 : index
    %8 = vector.load %arg6[%c0_9, %c0_10] : memref<1x136xf32, #tpu.memory_space<vmem>>, vector<1x136xf32>
    %cst_11 = arith.constant dense<0.000000e+00> : vector<8x136xf32>
    %9 = tpu.matmul %6, %7, %cst_11 {dimension_numbers = #tpu.dot_dimension_numbers<[1], [0], [0], [1], [0, 0, 1, 1], [], []>} : vector<8x16xf32>, vector<16x136xf32>, vector<8x136xf32> -> vector<8x136xf32>
    %10 = vector.broadcast %8 : vector<1x136xf32> to vector<8x136xf32>
    %11 = arith.addf %9, %10 : vector<8x136xf32>
    %12 = vector.extract_strided_slice %11 {offsets = [0, 128], sizes = [8, 2], strides = [1, 1]} : vector<8x136xf32> to vector<8x2xf32>
    %13 = vector.extract_strided_slice %5 {offsets = [0, 64], sizes = [8, 2], strides = [1, 1]} : vector<8x68xf32> to vector<8x2xf32>
    %14 = vector.extract_strided_slice %5 {offsets = [0, 0], sizes = [8, 64], strides = [1, 1]} : vector<8x68xf32> to vector<8x64xf32>
    %15 = vector.shape_cast %12 : vector<8x2xf32> to vector<8x2x1xf32>
    %16 = tpu.transpose %13, [1, 0] : vector<8x2xf32> -> vector<2x8xf32>
    %17 = vector.shape_cast %16 : vector<2x8xf32> to vector<1x2x8xf32>
    %18 = vector.broadcast %15 : vector<8x2x1xf32> to vector<8x2x8xf32>
    %19 = vector.broadcast %17 : vector<1x2x8xf32> to vector<8x2x8xf32>
    %20 = arith.addf %18, %19 : vector<8x2x8xf32>
    %cst_12 = arith.constant 0.000000e+00 : f32
    %21 = vector.broadcast %cst_12 : f32 to vector<8x2x8xf32>
    %22 = arith.cmpf ogt, %20, %21 : vector<8x2x8xf32>
    %cst_13 = arith.constant 2.000000e-01 : f32
    %23 = vector.broadcast %cst_13 : f32 to vector<8x2x8xf32>
    %24 = arith.mulf %23, %20 : vector<8x2x8xf32>
    %25 = arith.select %22, %20, %24 : vector<8x2x8xi1>, vector<8x2x8xf32>
    %c0_14 = arith.constant 0 : index
    %c0_15 = arith.constant 0 : index
    %26 = vector.load %arg7[%c0_14, %c0_15] : memref<8x8xf32, #tpu.memory_space<vmem>>, vector<8x8xf32>
    %27 = vector.shape_cast %26 : vector<8x8xf32> to vector<8x1x8xf32>
    %28 = vector.broadcast %27 : vector<8x1x8xf32> to vector<8x2x8xf32>
    %29 = arith.addf %25, %28 : vector<8x2x8xf32>
    %cst_16 = arith.constant dense<0xFF800000> : vector<8x2xf32>
    %30 = vector.multi_reduction <maximumf>, %29, %cst_16 [2] : vector<8x2x8xf32> to vector<8x2xf32>
    %31 = vector.shape_cast %30 : vector<8x2xf32> to vector<8x2x1xf32>
    %32 = vector.broadcast %31 : vector<8x2x1xf32> to vector<8x2x8xf32>
    %33 = arith.subf %29, %32 : vector<8x2x8xf32>
    %34 = math.exp %33 : vector<8x2x8xf32>
    %cst_17 = arith.constant dense<0.000000e+00> : vector<8x2xf32>
    %35 = vector.multi_reduction <add>, %34, %cst_17 [2] : vector<8x2x8xf32> to vector<8x2xf32>
    %36 = vector.shape_cast %35 : vector<8x2xf32> to vector<8x2x1xf32>
    %cst_18 = arith.constant -1.000000e+29 : f32
    %37 = vector.broadcast %cst_18 : f32 to vector<8x2x1xf32>
    %38 = arith.cmpf ogt, %31, %37 : vector<8x2x1xf32>
    %39 = tpu.reciprocal %36 {approx = true} : vector<8x2x1xf32> -> vector<8x2x1xf32>
    %cst_19 = arith.constant 0.000000e+00 : f32
    %40 = vector.broadcast %cst_19 : f32 to vector<8x2x1xf32>
    %41 = arith.select %38, %39, %40 : vector<8x2x1xi1>, vector<8x2x1xf32>
    %42 = vector.broadcast %41 : vector<8x2x1xf32> to vector<8x2x8xf32>
    %43 = arith.mulf %34, %42 : vector<8x2x8xf32>
    %cst_20 = arith.constant 0.000000e+00 : f32
    %44 = vector.broadcast %cst_20 : f32 to vector<8x32xf32>
    %45 = vector.extract_strided_slice %43 {offsets = [0, 0, 0], sizes = [8, 1, 8], strides = [1, 1, 1]} : vector<8x2x8xf32> to vector<8x1x8xf32>
    %46 = vector.shape_cast %45 : vector<8x1x8xf32> to vector<8x8xf32>
    %47 = vector.extract_strided_slice %14 {offsets = [0, 0], sizes = [8, 32], strides = [1, 1]} : vector<8x64xf32> to vector<8x32xf32>
    %cst_21 = arith.constant dense<0.000000e+00> : vector<8x32xf32>
    %48 = tpu.matmul %46, %47, %cst_21 {dimension_numbers = #tpu.dot_dimension_numbers<[1], [0], [0], [1], [0, 0, 1, 1], [], []>} : vector<8x8xf32>, vector<8x32xf32>, vector<8x32xf32> -> vector<8x32xf32>
    %49 = arith.addf %44, %48 : vector<8x32xf32>
    %50 = vector.extract_strided_slice %43 {offsets = [0, 1, 0], sizes = [8, 1, 8], strides = [1, 1, 1]} : vector<8x2x8xf32> to vector<8x1x8xf32>
    %51 = vector.shape_cast %50 : vector<8x1x8xf32> to vector<8x8xf32>
    %52 = vector.extract_strided_slice %14 {offsets = [0, 32], sizes = [8, 32], strides = [1, 1]} : vector<8x64xf32> to vector<8x32xf32>
    %cst_22 = arith.constant dense<0.000000e+00> : vector<8x32xf32>
    %53 = tpu.matmul %51, %52, %cst_22 {dimension_numbers = #tpu.dot_dimension_numbers<[1], [0], [0], [1], [0, 0, 1, 1], [], []>} : vector<8x8xf32>, vector<8x32xf32>, vector<8x32xf32> -> vector<8x32xf32>
    %54 = arith.addf %49, %53 : vector<8x32xf32>
    %55 = vector.extract_strided_slice %11 {offsets = [0, 130], sizes = [8, 2], strides = [1, 1]} : vector<8x136xf32> to vector<8x2xf32>
    %56 = vector.extract_strided_slice %11 {offsets = [0, 132], sizes = [8, 2], strides = [1, 1]} : vector<8x136xf32> to vector<8x2xf32>
    %57 = vector.extract_strided_slice %11 {offsets = [0, 0], sizes = [8, 64], strides = [1, 1]} : vector<8x136xf32> to vector<8x64xf32>
    %58 = vector.shape_cast %55 : vector<8x2xf32> to vector<8x2x1xf32>
    %59 = tpu.transpose %56, [1, 0] : vector<8x2xf32> -> vector<2x8xf32>
    %60 = vector.shape_cast %59 : vector<2x8xf32> to vector<1x2x8xf32>
    %61 = vector.broadcast %58 : vector<8x2x1xf32> to vector<8x2x8xf32>
    %62 = vector.broadcast %60 : vector<1x2x8xf32> to vector<8x2x8xf32>
    %63 = arith.addf %61, %62 : vector<8x2x8xf32>
    %cst_23 = arith.constant 0.000000e+00 : f32
    %64 = vector.broadcast %cst_23 : f32 to vector<8x2x8xf32>
    %65 = arith.cmpf ogt, %63, %64 : vector<8x2x8xf32>
    %cst_24 = arith.constant 2.000000e-01 : f32
    %66 = vector.broadcast %cst_24 : f32 to vector<8x2x8xf32>
    %67 = arith.mulf %66, %63 : vector<8x2x8xf32>
    %68 = arith.select %65, %63, %67 : vector<8x2x8xi1>, vector<8x2x8xf32>
    %c0_25 = arith.constant 0 : index
    %c0_26 = arith.constant 0 : index
    %69 = vector.load %arg8[%c0_25, %c0_26] : memref<8x8xf32, #tpu.memory_space<vmem>>, vector<8x8xf32>
    %70 = vector.shape_cast %69 : vector<8x8xf32> to vector<8x1x8xf32>
    %71 = vector.broadcast %70 : vector<8x1x8xf32> to vector<8x2x8xf32>
    %72 = arith.addf %68, %71 : vector<8x2x8xf32>
    %cst_27 = arith.constant dense<0xFF800000> : vector<8x2xf32>
    %73 = vector.multi_reduction <maximumf>, %72, %cst_27 [2] : vector<8x2x8xf32> to vector<8x2xf32>
    %74 = vector.shape_cast %73 : vector<8x2xf32> to vector<8x2x1xf32>
    %75 = vector.broadcast %74 : vector<8x2x1xf32> to vector<8x2x8xf32>
    %76 = arith.subf %72, %75 : vector<8x2x8xf32>
    %77 = math.exp %76 : vector<8x2x8xf32>
    %cst_28 = arith.constant dense<0.000000e+00> : vector<8x2xf32>
    %78 = vector.multi_reduction <add>, %77, %cst_28 [2] : vector<8x2x8xf32> to vector<8x2xf32>
    %79 = vector.shape_cast %78 : vector<8x2xf32> to vector<8x2x1xf32>
    %cst_29 = arith.constant -1.000000e+29 : f32
    %80 = vector.broadcast %cst_29 : f32 to vector<8x2x1xf32>
    %81 = arith.cmpf ogt, %74, %80 : vector<8x2x1xf32>
    %82 = tpu.reciprocal %79 {approx = true} : vector<8x2x1xf32> -> vector<8x2x1xf32>
    %cst_30 = arith.constant 0.000000e+00 : f32
    %83 = vector.broadcast %cst_30 : f32 to vector<8x2x1xf32>
    %84 = arith.select %81, %82, %83 : vector<8x2x1xi1>, vector<8x2x1xf32>
    %85 = vector.broadcast %84 : vector<8x2x1xf32> to vector<8x2x8xf32>
    %86 = arith.mulf %77, %85 : vector<8x2x8xf32>
    %cst_31 = arith.constant 0.000000e+00 : f32
    %87 = vector.broadcast %cst_31 : f32 to vector<8x32xf32>
    %88 = vector.extract_strided_slice %86 {offsets = [0, 0, 0], sizes = [8, 1, 8], strides = [1, 1, 1]} : vector<8x2x8xf32> to vector<8x1x8xf32>
    %89 = vector.shape_cast %88 : vector<8x1x8xf32> to vector<8x8xf32>
    %90 = vector.extract_strided_slice %57 {offsets = [0, 0], sizes = [8, 32], strides = [1, 1]} : vector<8x64xf32> to vector<8x32xf32>
    %cst_32 = arith.constant dense<0.000000e+00> : vector<8x32xf32>
    %91 = tpu.matmul %89, %90, %cst_32 {dimension_numbers = #tpu.dot_dimension_numbers<[1], [0], [0], [1], [0, 0, 1, 1], [], []>} : vector<8x8xf32>, vector<8x32xf32>, vector<8x32xf32> -> vector<8x32xf32>
    %92 = arith.addf %87, %91 : vector<8x32xf32>
    %93 = vector.extract_strided_slice %86 {offsets = [0, 1, 0], sizes = [8, 1, 8], strides = [1, 1, 1]} : vector<8x2x8xf32> to vector<8x1x8xf32>
    %94 = vector.shape_cast %93 : vector<8x1x8xf32> to vector<8x8xf32>
    %95 = vector.extract_strided_slice %57 {offsets = [0, 32], sizes = [8, 32], strides = [1, 1]} : vector<8x64xf32> to vector<8x32xf32>
    %cst_33 = arith.constant dense<0.000000e+00> : vector<8x32xf32>
    %96 = tpu.matmul %94, %95, %cst_33 {dimension_numbers = #tpu.dot_dimension_numbers<[1], [0], [0], [1], [0, 0, 1, 1], [], []>} : vector<8x8xf32>, vector<8x32xf32>, vector<8x32xf32> -> vector<8x32xf32>
    %97 = arith.addf %92, %96 : vector<8x32xf32>
    %98 = arith.addf %54, %97 : vector<8x32xf32>
    %99 = vector.extract_strided_slice %5 {offsets = [0, 66], sizes = [8, 2], strides = [1, 1]} : vector<8x68xf32> to vector<8x2xf32>
    %100 = vector.extract_strided_slice %11 {offsets = [0, 134], sizes = [8, 2], strides = [1, 1]} : vector<8x136xf32> to vector<8x2xf32>
    %101 = vector.extract_strided_slice %11 {offsets = [0, 64], sizes = [8, 64], strides = [1, 1]} : vector<8x136xf32> to vector<8x64xf32>
    %102 = vector.shape_cast %99 : vector<8x2xf32> to vector<8x2x1xf32>
    %103 = tpu.transpose %100, [1, 0] : vector<8x2xf32> -> vector<2x8xf32>
    %104 = vector.shape_cast %103 : vector<2x8xf32> to vector<1x2x8xf32>
    %105 = vector.broadcast %102 : vector<8x2x1xf32> to vector<8x2x8xf32>
    %106 = vector.broadcast %104 : vector<1x2x8xf32> to vector<8x2x8xf32>
    %107 = arith.addf %105, %106 : vector<8x2x8xf32>
    %cst_34 = arith.constant 0.000000e+00 : f32
    %108 = vector.broadcast %cst_34 : f32 to vector<8x2x8xf32>
    %109 = arith.cmpf ogt, %107, %108 : vector<8x2x8xf32>
    %cst_35 = arith.constant 2.000000e-01 : f32
    %110 = vector.broadcast %cst_35 : f32 to vector<8x2x8xf32>
    %111 = arith.mulf %110, %107 : vector<8x2x8xf32>
    %112 = arith.select %109, %107, %111 : vector<8x2x8xi1>, vector<8x2x8xf32>
    %c0_36 = arith.constant 0 : index
    %c0_37 = arith.constant 0 : index
    %113 = vector.load %arg9[%c0_36, %c0_37] : memref<8x8xf32, #tpu.memory_space<vmem>>, vector<8x8xf32>
    %114 = vector.shape_cast %113 : vector<8x8xf32> to vector<8x1x8xf32>
    %115 = vector.broadcast %114 : vector<8x1x8xf32> to vector<8x2x8xf32>
    %116 = arith.addf %112, %115 : vector<8x2x8xf32>
    %cst_38 = arith.constant dense<0xFF800000> : vector<8x2xf32>
    %117 = vector.multi_reduction <maximumf>, %116, %cst_38 [2] : vector<8x2x8xf32> to vector<8x2xf32>
    %118 = vector.shape_cast %117 : vector<8x2xf32> to vector<8x2x1xf32>
    %119 = vector.broadcast %118 : vector<8x2x1xf32> to vector<8x2x8xf32>
    %120 = arith.subf %116, %119 : vector<8x2x8xf32>
    %121 = math.exp %120 : vector<8x2x8xf32>
    %cst_39 = arith.constant dense<0.000000e+00> : vector<8x2xf32>
    %122 = vector.multi_reduction <add>, %121, %cst_39 [2] : vector<8x2x8xf32> to vector<8x2xf32>
    %123 = vector.shape_cast %122 : vector<8x2xf32> to vector<8x2x1xf32>
    %cst_40 = arith.constant -1.000000e+29 : f32
    %124 = vector.broadcast %cst_40 : f32 to vector<8x2x1xf32>
    %125 = arith.cmpf ogt, %118, %124 : vector<8x2x1xf32>
    %126 = tpu.reciprocal %123 {approx = true} : vector<8x2x1xf32> -> vector<8x2x1xf32>
    %cst_41 = arith.constant 0.000000e+00 : f32
    %127 = vector.broadcast %cst_41 : f32 to vector<8x2x1xf32>
    %128 = arith.select %125, %126, %127 : vector<8x2x1xi1>, vector<8x2x1xf32>
    %129 = vector.broadcast %128 : vector<8x2x1xf32> to vector<8x2x8xf32>
    %130 = arith.mulf %121, %129 : vector<8x2x8xf32>
    %cst_42 = arith.constant 0.000000e+00 : f32
    %131 = vector.broadcast %cst_42 : f32 to vector<8x32xf32>
    %132 = vector.extract_strided_slice %130 {offsets = [0, 0, 0], sizes = [8, 1, 8], strides = [1, 1, 1]} : vector<8x2x8xf32> to vector<8x1x8xf32>
    %133 = vector.shape_cast %132 : vector<8x1x8xf32> to vector<8x8xf32>
    %134 = vector.extract_strided_slice %101 {offsets = [0, 0], sizes = [8, 32], strides = [1, 1]} : vector<8x64xf32> to vector<8x32xf32>
    %cst_43 = arith.constant dense<0.000000e+00> : vector<8x32xf32>
    %135 = tpu.matmul %133, %134, %cst_43 {dimension_numbers = #tpu.dot_dimension_numbers<[1], [0], [0], [1], [0, 0, 1, 1], [], []>} : vector<8x8xf32>, vector<8x32xf32>, vector<8x32xf32> -> vector<8x32xf32>
    %136 = arith.addf %131, %135 : vector<8x32xf32>
    %137 = vector.extract_strided_slice %130 {offsets = [0, 1, 0], sizes = [8, 1, 8], strides = [1, 1, 1]} : vector<8x2x8xf32> to vector<8x1x8xf32>
    %138 = vector.shape_cast %137 : vector<8x1x8xf32> to vector<8x8xf32>
    %139 = vector.extract_strided_slice %101 {offsets = [0, 32], sizes = [8, 32], strides = [1, 1]} : vector<8x64xf32> to vector<8x32xf32>
    %cst_44 = arith.constant dense<0.000000e+00> : vector<8x32xf32>
    %140 = tpu.matmul %138, %139, %cst_44 {dimension_numbers = #tpu.dot_dimension_numbers<[1], [0], [0], [1], [0, 0, 1, 1], [], []>} : vector<8x8xf32>, vector<8x32xf32>, vector<8x32xf32> -> vector<8x32xf32>
    %141 = arith.addf %136, %140 : vector<8x32xf32>
    %cst_45 = arith.constant 5.000000e-01 : f32
    %142 = vector.broadcast %cst_45 : f32 to vector<8x32xf32>
    %143 = arith.mulf %141, %142 : vector<8x32xf32>
    %cst_46 = arith.constant 0.000000e+00 : f32
    %144 = vector.broadcast %cst_46 : f32 to vector<8x32xf32>
    %145 = arith.cmpf ogt, %143, %144 : vector<8x32xf32>
    %cst_47 = arith.constant 0.000000e+00 : f32
    %146 = vector.broadcast %cst_47 : f32 to vector<8x32xf32>
    %147 = arith.minimumf %143, %146 : vector<8x32xf32>
    %148 = math.exp %147 : vector<8x32xf32>
    %cst_48 = arith.constant 1.000000e+00 : f32
    %149 = vector.broadcast %cst_48 : f32 to vector<8x32xf32>
    %150 = arith.subf %148, %149 : vector<8x32xf32>
    %151 = arith.select %145, %143, %150 : vector<8x32xi1>, vector<8x32xf32>
    %c0_49 = arith.constant 0 : index
    %c0_50 = arith.constant 0 : index
    %152 = vector.load %arg10[%c0_49, %c0_50] : memref<8x32xf32, #tpu.memory_space<vmem>>, vector<8x32xf32>
    tpu.vector_store %arg10[%c0_49, %c0_50], %151 {strides = array<i32>} : memref<8x32xf32, #tpu.memory_space<vmem>>, vector<8x32xf32>,
    %cst_51 = arith.constant 2.500000e-01 : f32
    %153 = vector.broadcast %cst_51 : f32 to vector<8x32xf32>
    %154 = arith.mulf %98, %153 : vector<8x32xf32>
    %cst_52 = arith.constant 0.000000e+00 : f32
    %155 = vector.broadcast %cst_52 : f32 to vector<8x32xf32>
    %156 = arith.cmpf ogt, %154, %155 : vector<8x32xf32>
    %cst_53 = arith.constant 0.000000e+00 : f32
    %157 = vector.broadcast %cst_53 : f32 to vector<8x32xf32>
    %158 = arith.minimumf %154, %157 : vector<8x32xf32>
    %159 = math.exp %158 : vector<8x32xf32>
    %cst_54 = arith.constant 1.000000e+00 : f32
    %160 = vector.broadcast %cst_54 : f32 to vector<8x32xf32>
    %161 = arith.subf %159, %160 : vector<8x32xf32>
    %162 = arith.select %156, %154, %161 : vector<8x32xi1>, vector<8x32xf32>
    %c0_55 = arith.constant 0 : index
    %c0_56 = arith.constant 0 : index
    %163 = vector.load %arg11[%c0_55, %c0_56] : memref<8x32xf32, #tpu.memory_space<vmem>>, vector<8x32xf32>
    tpu.vector_store %arg11[%c0_55, %c0_56], %162 {strides = array<i32>} : memref<8x32xf32, #tpu.memory_space<vmem>>, vector<8x32xf32>,
    return
  }
  func.func @transform_0(%arg0: i32) -> (i32, i32) {
    %c0_i32 = arith.constant 0 : i32
    %c0_i32_0 = arith.constant 0 : i32
    %c0_i32_1 = arith.constant 0 : i32
    return %c0_i32, %c0_i32_0 : i32, i32
  }
  func.func @transform_1(%arg0: i32) -> (i32, i32) {
    %c0_i32 = arith.constant 0 : i32
    %c0_i32_0 = arith.constant 0 : i32
    %c0_i32_1 = arith.constant 0 : i32
    return %c0_i32, %c0_i32_0 : i32, i32
  }
  func.func @transform_2(%arg0: i32) -> (i32, i32) {
    %c0_i32 = arith.constant 0 : i32
    %c0_i32_0 = arith.constant 0 : i32
    %c0_i32_1 = arith.constant 0 : i32
    return %c0_i32, %c0_i32_0 : i32, i32
  }
  func.func @transform_3(%arg0: i32) -> (i32, i32) {
    %c0_i32 = arith.constant 0 : i32
    %c0_i32_0 = arith.constant 0 : i32
    %c0_i32_1 = arith.constant 0 : i32
    return %c0_i32, %c0_i32_0 : i32, i32
  }
  func.func @transform_4(%arg0: i32) -> (i32, i32) {
    %c0_i32 = arith.constant 0 : i32
    %c0_i32_0 = arith.constant 0 : i32
    %c0_i32_1 = arith.constant 0 : i32
    return %c0_i32, %c0_i32_0 : i32, i32
  }
  func.func @transform_5(%arg0: i32) -> (i32, i32) {
    %c0_i32 = arith.constant 0 : i32
    %c0_i32_0 = arith.constant 0 : i32
    %c0_i32_1 = arith.constant 0 : i32
    return %c0_i32, %c0_i32_0 : i32, i32
  }
  func.func @transform_6(%arg0: i32) -> (i32, i32) {
    %c0_i32 = arith.constant 0 : i32
    %c0_i32_0 = arith.constant 0 : i32
    %c0_i32_1 = arith.constant 0 : i32
    return %c0_i32, %c0_i32_0 : i32, i32
  }
  func.func @transform_7(%arg0: i32) -> (i32, i32) {
    %c0_i32 = arith.constant 0 : i32
    %c0_i32_0 = arith.constant 0 : i32
    %c0_i32_1 = arith.constant 0 : i32
    return %c0_i32, %c0_i32_0 : i32, i32
  }
  func.func @transform_8(%arg0: i32) -> (i32, i32) {
    %c0_i32 = arith.constant 0 : i32
    %c0_i32_0 = arith.constant 0 : i32
    %c0_i32_1 = arith.constant 0 : i32
    return %c0_i32, %c0_i32_0 : i32, i32
  }
  func.func @transform_9(%arg0: i32) -> (i32, i32) {
    %c0_i32 = arith.constant 0 : i32
    %c0_i32_0 = arith.constant 0 : i32
    %c0_i32_1 = arith.constant 0 : i32
    return %c0_i32, %c0_i32_0 : i32, i32
  }
  func.func @transform_10(%arg0: i32) -> (i32, i32) {
    %c0_i32 = arith.constant 0 : i32
    %c0_i32_0 = arith.constant 0 : i32
    %c0_i32_1 = arith.constant 0 : i32
    return %c0_i32, %c0_i32_0 : i32, i32
  }
}

</mosaic_0001>

<bundles_post_ra>
// kernel: tpu_custom_call.1
= control target key start
LH: loop header
LB: loop body
LE: loop exit
PB: predicated region body
PF: predicated region fallthrough
CT: control target
= control target key end

     0   :  { %16 = vsyncpa [#allocation3], 0  ;;  %s2315_s0 = inlined_call_operand.hbm [shape: f32[8,16], index: 0, kind: input, shape index: {}]   ;;  %s2316_s1 = inlined_call_operand.hbm [shape: f32[16,68], index: 1, kind: input, shape index: {}]   ;;  %s2317_s2 = inlined_call_operand.vmem [shape: f32[1,68], index: 2, kind: input, shape index: {}]   ;;  %s2318_s3 = inlined_call_operand.hbm [shape: f32[8,16], index: 3, kind: input, shape index: {}]   ;;  %s2319_s4 = inlined_call_operand.hbm [shape: f32[16,136], index: 4, kind: input, shape index: {}]   ;;  %s2320_s5 = inlined_call_operand.vmem [shape: f32[1,136], index: 5, kind: input, shape index: {}]   ;;  %s2321_s6 = inlined_call_operand.hbm [shape: f32[8,8], index: 6, kind: input, shape index: {}]   ;;  %s2322_s7 = inlined_call_operand.hbm [shape: f32[8,8], index: 7, kind: input, shape index: {}]   ;;  %s2323_s8 = inlined_call_operand.hbm [shape: f32[8,8], index: 8, kind: input, shape index: {}]   ;;  %s2324_s9 = inlined_call_operand.hbm [shape: f32[8,32], index: 9, kind: output, shape index: {0}]   ;;  %s2325_s10 = inlined_call_operand.hbm [shape: f32[8,32], index: 10, kind: output, shape index: {1}]  }
   0x1   :  { %17 = vsyncpa [#allocation6], 0 }
   0x2   :  { %18 = vsyncpa [#allocation9], 0 }
   0x3   :  { %19 = vsyncpa [#allocation12], 0 }
   0x4   :  { %20 = vsyncpa [#allocation4], 0  ;;  %s37_s15 = sshll.u32 %s2316_s1, 4  ;;  %s38_s15 = int_to_ptr.hbm [resolvable:$true] %s37_s15 }
   0x5   :  { %21 = vsyncpa [#allocation16], 0  ;;  %s1678_s16 = smov [#allocation5]   ;;  %s63_s20 = sshll.u32 %s2319_s4, 4  ;;  %s64_s20 = int_to_ptr.hbm [resolvable:$true] %s63_s20 }
   0x6   :  { %s39_s17 = sshll.u32 %s1678_s16, 4  ;;  %s1679_s21 = smov 128   ;;  %s40_s17 = int_to_ptr.vmem [resolvable:$true] %s39_s17 }
   0x7   :  { %s1680_s22 = smov 8   ;;  %s1681_s23 = smov [#allocation8]  }
   0x8   :  { %45 = dma.hbm_to_vmem [thread:$0]  %s38_s15, 256, %s40_s17, [#allocation6], %s1679_s21, %s1679_s21, %s1680_s22  }
   0x9   :  { %s65_s24 = sshll.u32 %s1681_s23, 4  ;;  %s1682_s25 = smov 256   ;;  %s66_s24 = int_to_ptr.vmem [resolvable:$true] %s65_s24 }
   0xa   :  { %s1683_s26 = smov 16   ;;  %s90_s28 = sshll.u32 %s2322_s7, 4  ;;  %s91_s28 = int_to_ptr.hbm [resolvable:$true] %s90_s28 }
   0xb   :  { %71 = dma.hbm_to_vmem [thread:$0]  %s64_s20, 512, %s66_s24, [#allocation9], %s1682_s25, %s1682_s25, %s1683_s26  }
   0xc   :  { %s1684_s29 = smov [#allocation11]   ;;  %s27_s12 = sshll.u32 %s2315_s0, 4  ;;  %s28_s12 = int_to_ptr.hbm [resolvable:$true] %s27_s12 }
   0xd   :  { %s92_s30 = sshll.u32 %s1684_s29, 4  ;;  %s1685_s13 = smov [#allocation2]   ;;  %s93_s30 = int_to_ptr.vmem [resolvable:$true] %s92_s30 }
   0xe   :  { %95 = dma.hbm_to_vmem [thread:$0]  %s91_s28, 128, %s93_s30, [#allocation12]  }
   0xf   :  { %s29_s14 = sshll.u32 %s1685_s13, 4  ;;  %s53_s17 = sshll.u32 %s2318_s3, 4  ;;  %s30_s14 = int_to_ptr.vmem [resolvable:$true] %s29_s14  ;;  %s54_s17 = int_to_ptr.hbm [resolvable:$true] %s53_s17 }
  0x10   :  { %32 = dma.hbm_to_vmem [thread:$0]  %s28_s12, 128, %s30_s14, [#allocation3]  }
  0x11   :  { %s79_s19 = sshll.u32 %s2321_s6, 4  ;;  %s1686_s20 = smov [#allocation7]   ;;  %s80_s19 = int_to_ptr.hbm [resolvable:$true] %s79_s19 }
  0x12   :  { %s55_s21 = sshll.u32 %s1686_s20, 4  ;;  %s1687_s0 = smov [#allocation10]   ;;  %s56_s21 = int_to_ptr.vmem [resolvable:$true] %s55_s21 }
  0x13   :  { %58 = dma.hbm_to_vmem [thread:$0]  %s54_s17, 128, %s56_s21, [#allocation6]  }
  0x14   :  { %s81_s22 = sshll.u32 %s1687_s0, 4  ;;  %s101_s25 = sshll.u32 %s2323_s8, 4  ;;  %s82_s22 = int_to_ptr.vmem [resolvable:$true] %s81_s22  ;;  %s102_s25 = int_to_ptr.hbm [resolvable:$true] %s101_s25 }
  0x15   :  { %84 = dma.hbm_to_vmem [thread:$0]  %s80_s19, 128, %s82_s22, [#allocation9]  }
  0x16   :  { %s1688_s3 = smov [#allocation13]  }
  0x17   :  { %s103_s26 = sshll.u32 %s1688_s3, 4  ;;  %s104_s26 = int_to_ptr.vmem [resolvable:$true] %s103_s26 }
  0x18   :  { %106 = dma.hbm_to_vmem [thread:$0]  %s102_s25, 128, %s104_s26, [#allocation12]  }
  0x19   :  { %1666 = dma.done.wait [#allocation3], 128  }
  0x1a   :  { %1667 = vsyncadd [#allocation3], 4294967168 }
  0x1b   :  { %1668 = dma.done.wait [#allocation6], 384  }
  0x1c   :  { %1669 = vsyncadd [#allocation6], 4294966912 }
  0x1d   :  { %1670 = dma.done.wait [#allocation9], 640  }
  0x1e   :  { %1671 = vsyncadd [#allocation9], 4294966656 }
  0x1f   :  { %1672 = dma.done.wait [#allocation12], 256  }
  0x20   :  { %1673 = vsyncadd [#allocation12], 4294967040  ;;  %v221_v0 = vlaneseq  ;;  %v137_v3 = vld [vmem:[#allocation5 + $0x8] sm:$0xff]  ;;  %v136_v4 = vld [vmem:[#allocation5] sm:$0xff]  ;;  %vm142_vm0 = vcmask 130048   ;;  %s1689_s28 = smov 64  }
  0x21   :  { %160 = vmatpush.msra.mxu0 %v137_v3  ;;  %v135_v5 = vld [vmem:[#allocation2] sm:$0xff]  ;;  %v170_v6 = vld [vmem:[#allocation8 + $0x18] sm:$0xff]  ;;  %v168_v7 = vld [vmem:[#allocation8 + $0x8] sm:$0xff]  ;;  %s1691_s29 = smov 124   ;;  %vm377_vm3 = vcmask 58368   ;;  %s1692_s30 = smov 96  }
  0x22   :  { %v1772_v1 = vshrl.u32 %v221_v0, 7  ;;  %214 = vmatpush.msra.mxu2 %v170_v6  ;;  %v1780_v8 = vld [vmem:[#allocation7] sm:$0xff]  ;;  %v1348_v9 = vld [vmem:[%s2317_s2] ss:$0 sm:$0xff]  ;;  %s1690_s2 = smov 122   ;;  %s1694_s12 = smov [#allocation15]  }
  0x23   :  { %161 = vmatpush.msra.mxu0 %v136_v4  ;;  %v171_v12 = vld [vmem:[%s2320_s5] sm:$0x3]  ;;  %s1290_s13 = sshll.u32 %s1694_s12, 4  ;;  %s1292_s16 = sshll.u32 %s2325_s10, 4  ;;  %s1291_s13 = int_to_ptr.vmem [resolvable:$true] %s1290_s13  ;;  %s1293_s16 = int_to_ptr.hbm [resolvable:$true] %s1292_s16 }
  0x24   :  { %v1775_v2 = vadd.s32 66, %v1772_v1  ;;  %1341 = vset.pattern.permute.xlu0 %v1772_v1  ;;  %1343 = vset.pattern.permute.xlu2 %v1772_v1  ;;  %v174_v14 = vperm.slane %v171_v12, 1  ;;  %v575_v25 = vadd.s32 2, %v1772_v1  ;;  %v1826_v49 = vld [vmem:[#allocation10] sm:$0xff]  ;;  %s1695_s17 = smov [#allocation14]   ;;  %s1281_s20 = sshll.u32 %s2324_s9, 4  ;;  %s1282_s20 = int_to_ptr.hbm [resolvable:$true] %s1281_s20 }
  0x25   :  { %1310 = vmatmul.msk.f32.vlgmr.msra.gmra.mxu0 %vm142_vm0, %v135_v5  ;;  %215 = vmatpush.msra.mxu2 %v168_v7  ;;  %v347_v50 = vrot.slane %v1826_v49, 2  ;;  %v353_v57 = vperm.slane %v1826_v49, 0  ;;  %v349_v61 = vrot.slane %v1826_v49, 4  ;;  %s1279_s7 = sshll.u32 %s1695_s17, 4  ;;  %s1280_s7 = int_to_ptr.vmem [resolvable:$true] %s1279_s7 }
  0x26   :  { %1340 = vset.pattern.permute.xlu1 %v1775_v2  ;;  %1312 = vmatmul.msk.f32.vlgmr.msra.gmra.mxu2 %vm142_vm0, %v1780_v8 }
  0x27   :  { %v355_v58 = vperm.slane %v347_v50, 0  ;;  %v357_v5 = vperm.slane %v349_v61, 0 }
  0xa2   :  { %v163_v10 = vpop.f32.mrf.mxu0 }
  0xa3   :  { %v1788_v11 = vadd.f32 %v1348_v9, %v163_v10  ;;  %v351_v10 = vrot.slane %v1826_v49, 6 }
  0xa5   :  { %277 = vrot.lane.b32.xlu2 %v1788_v11, %s1689_s28  ;;  %v911_v13 = vperm.slane %v1788_v11, 0  ;;  %v918_v18 = vperm.slane %v1788_v11, 1  ;;  %v925_v21 = vperm.slane %v1788_v11, 2  ;;  %v932_v24 = vperm.slane %v1788_v11, 3 }
  0xa6   :  { %v939_v26 = vperm.slane %v1788_v11, 4  ;;  %v946_v27 = vperm.slane %v1788_v11, 5  ;;  %v953_v30 = vperm.slane %v1788_v11, 6  ;;  %v960_v31 = vperm.slane %v1788_v11, 7 }
  0xa7   :  { %916 = vperm.xlu1 %1340, %v911_v13  }
  0xa9   :  { %v217_v15 = vpop.f32.mrf.mxu2 }
  0xaa   :  { %v218_v16 = vadd.f32 %v217_v15, %v174_v14  ;;  %v359_v14 = vperm.slane %v351_v10, 0 }
  0xac   :  { %v220_v17 = vperm.slane %v218_v16, 0  ;;  %v248_v19 = vperm.slane %v218_v16, 4  ;;  %v227_v20 = vperm.slane %v218_v16, 1  ;;  %v255_v22 = vperm.slane %v218_v16, 5 }
  0xad   :  { %967 = vrot.lane.b32.xlu2 %v218_v16, %s1690_s2  ;;  %v262_v23 = vperm.slane %v218_v16, 6  ;;  %v241_v28 = vperm.slane %v218_v16, 3  ;;  %v269_v29 = vperm.slane %v218_v16, 7  ;;  %v234_v32 = vperm.slane %v218_v16, 2 }
  0xae   :  { %225 = vperm.xlu0 %1341, %v220_v17  }
  0xaf   :  { %923 = vperm.xlu1 %1340, %v918_v18  }
  0xb5   :  { %253 = vperm.xlu2 %1343, %v248_v19  }
  0xb6   :  { %232 = vperm.xlu0 %1341, %v227_v20  }
  0xb7   :  { %930 = vperm.xlu1 %1340, %v925_v21  }
  0xbd   :  { %260 = vperm.xlu2 %1343, %v255_v22  }
  0xbe   :  { %267 = vperm.xlu0 %1341, %v262_v23  }
  0xbf   :  { %937 = vperm.xlu1 %1340, %v932_v24  }
  0xc5   :  { %1344 = vset.pattern.permute.xlu2 %v575_v25 }
  0xc6   :  { %1345 = vset.pattern.permute.xlu0 %v575_v25 }
  0xc7   :  { %944 = vperm.xlu1 %1340, %v939_v26   ;;  %v348_v26 = vrot.slane %v1826_v49, 3 }
  0xcd   :  { %577 = vperm.xlu2 %1344, %v220_v17  }
  0xce   :  { %583 = vperm.xlu0 %1345, %v227_v20  }
  0xcf   :  { %951 = vperm.xlu1 %1340, %v946_v27  }
  0xd5   :  { %595 = vperm.xlu2 %1344, %v241_v28  }
  0xd6   :  { %619 = vperm.xlu0 %1345, %v269_v29  }
  0xd7   :  { %958 = vperm.xlu1 %1340, %v953_v30   ;;  %v356_v30 = vperm.slane %v348_v26, 0 }
  0xdd   :  { %601 = vperm.xlu2 %1344, %v248_v19   ;;  %v346_v19 = vrot.slane %v1826_v49, 1 }
  0xdf   :  { %965 = vperm.xlu1 %1340, %v960_v31  }
  0xe5   :  { %613 = vperm.xlu2 %1344, %v262_v23  }
  0xe7   :  { %1342 = vset.pattern.permute.xlu1 %v1772_v1 }
  0xe8   :  { %622 = vrot.lane.b32.xlu1 %v218_v16, %s1691_s29 }
  0xf0   :  { %239 = vperm.xlu1 %1342, %v234_v32  }
  0xf8   :  { %246 = vperm.xlu1 %1342, %v241_v28  }
  0xff   :  { %v278_v33 = vpop.permute.xlu2 %277 }
 0x100   :  { %274 = vperm.xlu1 %1342, %v269_v29   ;;  %280 = vxpose.xlu0.b32.start.end [1/1] (short) (narrow) %v278_v33, 8 }
 0x107   :  { %v968_v41 = vpop.permute.xlu2 %967 }
 0x108   :  { %1346 = vset.pattern.permute.xlu1 %v575_v25 }
 0x10f   :  { %v254_v51 = vpop.permute.xlu2 %253 }
 0x110   :  { %589 = vperm.xlu1 %1346, %v234_v32  }
 0x117   :  { %v261_v28 = vpop.permute.xlu2 %260 }
 0x118   :  { %607 = vperm.xlu1 %1346, %v255_v22   ;;  %v354_v22 = vperm.slane %v346_v19, 0 }
 0x119   :  { %v1805_v34 = vpop.permute.xlu1 %916 }
 0x120   :  { %v226_v44 = vpop.permute.xlu0 %225 }
 0x121   :  { %v1807_v35 = vpop.permute.xlu1 %923 }
 0x128   :  { %v233_v45 = vpop.permute.xlu0 %232 }
 0x129   :  { %v1809_v36 = vpop.permute.xlu1 %930 }
 0x130   :  { %v268_v46 = vpop.permute.xlu0 %267 }
 0x131   :  { %v1811_v37 = vpop.permute.xlu1 %937 }
 0x139   :  { %v1813_v38 = vpop.permute.xlu1 %944 }
 0x140   :  { %v1822_v47 = vpop.permute.xlu0 %583 }
 0x141   :  { %v1815_v39 = vpop.permute.xlu1 %951 }
 0x148   :  { %v1824_v48 = vpop.permute.xlu0 %619 }
 0x149   :  { %v1817_v40 = vpop.permute.xlu1 %958 }
 0x14d   :  { %970 = vxpose.xlu1.b32.start.end [1/1] (short) (narrow) %v968_v41, 8  ;;  %v350_v41 = vrot.slane %v1826_v49, 5 }
 0x151   :  { %v1819_v42 = vpop.permute.xlu1 %965 }
 0x15a   :  { %v623_v43 = vpop.permute.xlu1 %622 }
 0x15b   :  { %625 = vxpose.xlu2.b32.start.end [1/1] (short) (narrow) %v623_v43, 8 }
 0x162   :  { %v240_v52 = vpop.permute.xlu1 %239 }
 0x167   :  { %1347 = vset.pattern.permute.xlu0 %v1775_v2 }
 0x16a   :  { %v247_v21 = vpop.permute.xlu1 %246 }
 0x1a4   :  { %v1829_v53 = vpop.trf.xlu0 }
 0x1a5   :  { %v312_v54 = vadd.f32 %v1829_v53, %v226_v44  ;;  %v314_v55 = vadd.f32 %v1829_v53, %v240_v52  ;;  %v316_v56 = vadd.f32 %v1829_v53, %v254_v51  ;;  %v318_v7 = vadd.f32 %v1829_v53, %v268_v46  ;;  %v275_v44 = vpop.permute.xlu1 %274 }
 0x1a6   :  { %v313_v18 = vadd.f32 %v1829_v53, %v233_v45  ;;  %v315_v24 = vadd.f32 %v1829_v53, %v247_v21  ;;  %v317_v32 = vadd.f32 %v1829_v53, %v261_v28  ;;  %v358_v46 = vperm.slane %v350_v41, 0  ;;  %v1919_v41 = vld [vmem:[#allocation11] sm:$0xff] }
 0x1a7   :  { %vm320_vm1 = vcmp.gt.f32.partialorder %v312_v54, 0.0  ;;  %v328_v59 = vmul.f32 0.2, %v312_v54  ;;  %vm322_vm2 = vcmp.gt.f32.partialorder %v314_v55, 0.0  ;;  %v330_v60 = vmul.f32 0.2, %v314_v55 }
 0x1a8   :  { %v332_v0 = vmul.f32 0.2, %v316_v56  ;;  %vm324_vm4 = vcmp.gt.f32.partialorder %v316_v56, 0.0  ;;  %v334_v12 = vmul.f32 0.2, %v318_v7  ;;  %vm326_vm5 = vcmp.gt.f32.partialorder %v318_v7, 0.0 }
 0x1a9   :  { %v336_v62 = vsel %vm320_vm1, %v312_v54, %v328_v59  ;;  %v338_v63 = vsel %vm322_vm2, %v314_v55, %v330_v60  ;;  %v329_v20 = vmul.f32 0.2, %v313_v18  ;;  %vm321_vm6 = vcmp.gt.f32.partialorder %v313_v18, 0.0 }
 0x1aa   :  { %v1836_v1 = vadd.f32 %v353_v57, %v336_v62  ;;  %v1838_v2 = vadd.f32 %v355_v58, %v338_v63  ;;  %v340_v6 = vsel %vm324_vm4, %v316_v56, %v332_v0  ;;  %v342_v15 = vsel %vm326_vm5, %v318_v7, %v334_v12  ;;  %v1872_v56 = vpop.permute.xlu2 %577  ;;  %v1886_v63 = vld [vmem:[#allocation13] sm:$0xff] }
 0x1ab   :  { %v1845_v9 = vadd.f32 %v357_v5, %v340_v6  ;;  %v1850_v16 = vadd.f32 %v359_v14, %v342_v15  ;;  %v337_v23 = vsel %vm321_vm6, %v313_v18, %v329_v20  ;;  %v331_v27 = vmul.f32 0.2, %v315_v24 }
 0x1ac   :  { %v378_v3 = vsel %vm377_vm3, %v1836_v1, -inf  ;;  %v384_v4 = vsel %vm377_vm3, %v1838_v2, -inf  ;;  %v1857_v25 = vadd.f32 %v354_v22, %v337_v23  ;;  %vm323_vm7 = vcmp.gt.f32.partialorder %v315_v24, 0.0 }
 0x1ad   :  { %379 = vmax.xlane.f32.xlu1 %v378_v3  ;;  %385 = vmax.xlane.f32.xlu0 %v384_v4  ;;  %v390_v13 = vsel %vm377_vm3, %v1845_v9, -inf  ;;  %v396_v17 = vsel %vm377_vm3, %v1850_v16, -inf  ;;  %v339_v31 = vsel %vm323_vm7, %v315_v24, %v331_v27  ;;  %v333_v43 = vmul.f32 0.2, %v317_v32  ;;  %v1876_v60 = vpop.permute.xlu1 %589 }
 0x1ae   :  { %v381_v29 = vsel %vm377_vm3, %v1857_v25, -inf  ;;  %v1863_v33 = vadd.f32 %v356_v30, %v339_v31  ;;  %vm325_vm8 = vcmp.gt.f32.partialorder %v317_v32, 0.0  ;;  %v319_v51 = vadd.f32 %v1829_v53, %v275_v44 }
 0x1af   :  { %v341_v50 = vsel %vm325_vm8, %v317_v32, %v333_v43  ;;  %v352_v54 = vrot.slane %v1826_v49, 7  ;;  %v1038_v3 = vrot.slane %v1886_v63, 3  ;;  %v1036_v4 = vrot.slane %v1886_v63, 1 }
 0x1b0   :  { %v387_v45 = vsel %vm377_vm3, %v1863_v33, -inf  ;;  %v1869_v52 = vadd.f32 %v358_v46, %v341_v50  ;;  %v335_v55 = vmul.f32 0.2, %v319_v51  ;;  %vm327_vm9 = vcmp.gt.f32.partialorder %v319_v51, 0.0 }
 0x1b1   :  { %v360_v58 = vperm.slane %v352_v54, 0  ;;  %v1046_v12 = vperm.slane %v1038_v3, 0  ;;  %v1043_v14 = vperm.slane %v1886_v63, 0  ;;  %v1042_v32 = vrot.slane %v1886_v63, 7 }
 0x1b2   :  { %v393_v57 = vsel %vm377_vm3, %v1869_v52, -inf  ;;  %v343_v59 = vsel %vm327_vm9, %v319_v51, %v335_v55  ;;  %v1882_v62 = vpop.permute.xlu2 %595  ;;  %v696_v54 = vrot.slane %v1919_v41, 6 }
 0x1b3   :  { %v1878_v61 = vadd.f32 %v360_v58, %v343_v59  ;;  %v1050_v51 = vperm.slane %v1042_v32, 0  ;;  %v692_v32 = vrot.slane %v1919_v41, 2 }
 0x1b5   :  { %391 = vmax.xlane.f32.xlu1 %v390_v13  ;;  %v399_v53 = vsel %vm377_vm3, %v1878_v61, -inf  ;;  %v1884_v49 = vpop.permute.xlu1 %607  ;;  %v1044_v13 = vperm.slane %v1036_v4, 0  ;;  %v704_v4 = vperm.slane %v696_v54, 0  ;;  %v700_v54 = vperm.slane %v692_v32, 0 }
 0x1ba   :  { %v1888_v0 = vpop.permute.xlu2 %601 }
 0x1bd   :  { %397 = vmax.xlane.f32.xlu1 %v396_v17 }
 0x1c2   :  { %v614_v24 = vpop.permute.xlu2 %613 }
 0x1cc   :  { %382 = vmax.xlane.f32.xlu2 %v381_v29 }
 0x1d4   :  { %388 = vmax.xlane.f32.xlu2 %v387_v45  ;;  %v1039_v45 = vrot.slane %v1886_v63, 4 }
 0x1dc   :  { %394 = vmax.xlane.f32.xlu2 %v393_v57  ;;  %v1047_v57 = vperm.slane %v1039_v45, 0 }
 0x1e4   :  { %400 = vmax.xlane.f32.xlu2 %v399_v53 }
 0x1f1   :  { %v1892_v5 = vpop.trf.xlu1 }
 0x1f2   :  { %v1005_v6 = vadd.f32 %v1892_v5, %v1811_v37  ;;  %v1003_v7 = vadd.f32 %v1892_v5, %v1807_v35  ;;  %v1002_v10 = vadd.f32 %v1892_v5, %v1805_v34  ;;  %v1004_v15 = vadd.f32 %v1892_v5, %v1809_v36 }
 0x1f3   :  { %v1037_v35 = vrot.slane %v1886_v63, 2  ;;  %v1006_v31 = vadd.f32 %v1892_v5, %v1813_v38  ;;  %v1009_v43 = vadd.f32 %v1892_v5, %v1819_v42 }
 0x1f4   :  { %vm1013_vm10 = vcmp.gt.f32.partialorder %v1005_v6, 0.0  ;;  %v1021_v17 = vmul.f32 0.2, %v1005_v6  ;;  %vm1011_vm11 = vcmp.gt.f32.partialorder %v1003_v7, 0.0  ;;  %v1019_v18 = vmul.f32 0.2, %v1003_v7  ;;  %v1926_v50 = vpop.trf.xlu2 }
 0x1f5   :  { %vm1010_vm12 = vcmp.gt.f32.partialorder %v1002_v10, 0.0  ;;  %v1018_v19 = vmul.f32 0.2, %v1002_v10  ;;  %v1020_v23 = vmul.f32 0.2, %v1004_v15  ;;  %vm1012_vm13 = vcmp.gt.f32.partialorder %v1004_v15, 0.0 }
 0x1f6   :  { %v1029_v37 = vsel %vm1013_vm10, %v1005_v6, %v1021_v17  ;;  %v1027_v20 = vsel %vm1011_vm11, %v1003_v7, %v1019_v18  ;;  %v1045_v29 = vperm.slane %v1037_v35, 0  ;;  %v1022_v46 = vmul.f32 0.2, %v1006_v31 }
 0x1f7   :  { %v1904_v21 = vadd.f32 %v1046_v12, %v1029_v37  ;;  %v1906_v34 = vadd.f32 %v1044_v13, %v1027_v20  ;;  %v1026_v22 = vsel %vm1010_vm12, %v1002_v10, %v1018_v19  ;;  %v1028_v30 = vsel %vm1012_vm13, %v1004_v15, %v1020_v23 }
 0x1f8   :  { %v1908_v26 = vadd.f32 %v1043_v14, %v1026_v22  ;;  %v1923_v44 = vadd.f32 %v1045_v29, %v1028_v30  ;;  %vm1014_vm14 = vcmp.gt.f32.partialorder %v1006_v31, 0.0  ;;  %vm1017_vm15 = vcmp.gt.f32.partialorder %v1009_v43, 0.0 }
 0x1f9   :  { %v1076_v36 = vsel %vm377_vm3, %v1904_v21, -inf  ;;  %v1070_v27 = vsel %vm377_vm3, %v1906_v34, -inf  ;;  %v1025_v38 = vmul.f32 0.2, %v1009_v43  ;;  %v1030_v58 = vsel %vm1014_vm14, %v1006_v31, %v1022_v46 }
 0x1fa   :  { %1077 = vmax.xlane.f32.xlu1 %v1076_v36  ;;  %1071 = vmax.xlane.f32.xlu2 %v1070_v27  ;;  %v1067_v28 = vsel %vm377_vm3, %v1908_v26, -inf  ;;  %v1073_v55 = vsel %vm377_vm3, %v1923_v44, -inf  ;;  %v657_v42 = vadd.f32 %v1926_v50, %v1872_v56  ;;  %v663_v53 = vadd.f32 %v1926_v50, %v614_v24 }
 0x1fb   :  { %1068 = vmax.xlane.f32.xlu0 %v1067_v28  ;;  %v1033_v59 = vsel %vm1017_vm15, %v1009_v43, %v1025_v38  ;;  %v1936_v7 = vadd.f32 %v1047_v57, %v1030_v58  ;;  %v698_v56 = vperm.slane %v1919_v41, 0  ;;  %v658_v17 = vadd.f32 %v1926_v50, %v1822_v47 }
 0x1fc   :  { %v1934_v3 = vadd.f32 %v1050_v51, %v1033_v59  ;;  %vm671_vm1 = vcmp.gt.f32.partialorder %v663_v53, 0.0  ;;  %v679_v6 = vmul.f32 0.2, %v663_v53  ;;  %v673_v10 = vmul.f32 0.2, %v657_v42 }
 0x1fd   :  { %vm665_vm2 = vcmp.gt.f32.partialorder %v657_v42, 0.0  ;;  %v1079_v14 = vsel %vm377_vm3, %v1936_v7, -inf  ;;  %v691_v19 = vrot.slane %v1919_v41, 1  ;;  %v674_v37 = vmul.f32 0.2, %v658_v17 }
 0x1fe   :  { %v687_v12 = vsel %vm671_vm1, %v663_v53, %v679_v6  ;;  %v681_v15 = vsel %vm665_vm2, %v657_v42, %v673_v10  ;;  %vm666_vm4 = vcmp.gt.f32.partialorder %v658_v17, 0.0  ;;  %v1007_v23 = vadd.f32 %v1892_v5, %v1815_v39 }
 0x1ff   :  { %v1938_v13 = vadd.f32 %v704_v4, %v687_v12  ;;  %v1945_v18 = vadd.f32 %v698_v56, %v681_v15  ;;  %v699_v35 = vperm.slane %v691_v19, 0  ;;  %v682_v22 = vsel %vm666_vm4, %v658_v17, %v674_v37 }
 0x200   :  { %v1040_v24 = vrot.slane %v1886_v63, 5  ;;  %v1023_v36 = vmul.f32 0.2, %v1007_v23  ;;  %vm1015_vm5 = vcmp.gt.f32.partialorder %v1007_v23, 0.0  ;;  %v659_v30 = vadd.f32 %v1926_v50, %v1876_v60 }
 0x201   :  { %v722_v20 = vsel %vm377_vm3, %v1945_v18, -inf  ;;  %v1954_v47 = vadd.f32 %v699_v35, %v682_v22  ;;  %v1041_v42 = vrot.slane %v1886_v63, 6  ;;  %vm491_vm14 = vcmask 1041409  }
 0x202   :  { %v1048_v28 = vperm.slane %v1040_v24, 0  ;;  %v1031_v29 = vsel %vm1015_vm5, %v1007_v23, %v1023_v36  ;;  %v675_v39 = vmul.f32 0.2, %v659_v30  ;;  %vm667_vm6 = vcmp.gt.f32.partialorder %v659_v30, 0.0 }
 0x203   :  { %1074 = vmax.xlane.f32.xlu0 %v1073_v55  ;;  %v725_v27 = vsel %vm377_vm3, %v1954_v47, -inf  ;;  %v1008_v55 = vadd.f32 %v1892_v5, %v1817_v40  ;;  %v1049_v6 = vperm.slane %v1041_v42, 0  ;;  %v660_v40 = vadd.f32 %v1926_v50, %v1882_v62 }
 0x204   :  { %v1961_v31 = vadd.f32 %v1048_v28, %v1031_v29  ;;  %v683_v60 = vsel %vm667_vm6, %v659_v30, %v675_v39  ;;  %v694_v28 = vrot.slane %v1919_v41, 4  ;;  %vm494_vm4 = vcmask 1042434  }
 0x205   :  { %v1976_v58 = vadd.f32 %v700_v54, %v683_v60  ;;  %v1024_v59 = vmul.f32 0.2, %v1008_v55  ;;  %vm1016_vm7 = vcmp.gt.f32.partialorder %v1008_v55, 0.0  ;;  %v676_v56 = vmul.f32 0.2, %v660_v40 }
 0x206   :  { %v1082_v51 = vsel %vm377_vm3, %v1961_v31, -inf  ;;  %vm668_vm8 = vcmp.gt.f32.partialorder %v660_v40, 0.0  ;;  %vm497_vm5 = vcmask 1043459   ;;  %vm500_vm6 = vcmask 1044484  }
 0x207   :  { %v728_v4 = vsel %vm377_vm3, %v1976_v58, -inf  ;;  %v1032_v10 = vsel %vm1016_vm7, %v1008_v55, %v1024_v59 }
 0x208   :  { %v1991_v12 = vadd.f32 %v1049_v6, %v1032_v10 }
 0x20a   :  { %v1085_v19 = vsel %vm377_vm3, %v1991_v12, -inf }
 0x20b   :  { %1080 = vmax.xlane.f32.xlu0 %v1079_v14  ;;  %v693_v14 = vrot.slane %v1919_v41, 3 }
 0x20d   :  { %v701_v37 = vperm.slane %v693_v14, 0 }
 0x212   :  { %511 = vrot.lane.b32.xlu2 %v1788_v11, %s1692_s30 }
 0x213   :  { %723 = vmax.xlane.f32.xlu0 %v722_v20 }
 0x21b   :  { %726 = vmax.xlane.f32.xlu0 %v725_v27  ;;  %v661_v27 = vadd.f32 %v1926_v50, %v1888_v0  ;;  %v1088_v0 = vsel %vm377_vm3, %v1934_v3, -inf }
 0x21d   :  { %v677_v30 = vmul.f32 0.2, %v661_v27  ;;  %vm669_vm9 = vcmp.gt.f32.partialorder %v661_v27, 0.0 }
 0x21f   :  { %v685_v54 = vsel %vm669_vm9, %v661_v27, %v677_v30  ;;  %vm506_vm9 = vcmask 1046534  }
 0x220   :  { %v1964_v43 = vpop.xlane.xlu1 %379  ;;  %v1966_v45 = vpop.xlane.xlu0 %385 }
 0x221   :  { %v402_v46 = vsub.f32 %v1836_v1, %v1964_v43  ;;  %v404_v57 = vsub.f32 %v1838_v2, %v1966_v45  ;;  %vm452_vm13 = vcmp.gt.f32.partialorder %v1966_v45, -1e+29 }
 0x223   :  { %v410_v38 = vmul.f32 1.442695, %v402_v46  ;;  %1083 = vmax.xlane.f32.xlu0 %v1082_v51  ;;  %v414_v1 = vmul.f32 1.442695, %v404_v57  ;;  %v702_v51 = vperm.slane %v694_v28, 0 }
 0x225   :  { %1349 = vpow2.f32 %v410_v38  ;;  %v662_v38 = vadd.f32 %v1926_v50, %v1884_v49  ;;  %v2027_v55 = vadd.f32 %v702_v51, %v685_v54 }
 0x226   :  { %1351 = vpow2.f32 %v414_v1 }
 0x227   :  { %v678_v42 = vmul.f32 0.2, %v662_v38  ;;  %vm670_vm10 = vcmp.gt.f32.partialorder %v662_v38, 0.0  ;;  %v734_v49 = vsel %vm377_vm3, %v2027_v55, -inf }
 0x228   :  { %v1979_v53 = vpop.xlane.xlu1 %391 }
 0x229   :  { %v406_v63 = vsub.f32 %v1845_v9, %v1979_v53  ;;  %v684_v9 = vsel %vm668_vm8, %v660_v40, %v676_v56  ;;  %v686_v40 = vsel %vm670_vm10, %v662_v38, %v678_v42  ;;  %vm454_vm15 = vcmp.gt.f32.partialorder %v1979_v53, -1e+29 }
 0x22a   :  { %v2004_v22 = vadd.f32 %v701_v37, %v684_v9  ;;  %v664_v37 = vadd.f32 %v1926_v50, %v1824_v48  ;;  %v169_v9 = vld [vmem:[#allocation8 + $0x10] sm:$0xff]  ;;  %v740_v48 = vsel %vm377_vm3, %v1938_v13, -inf  ;;  %vm503_vm8 = vcmask 1045509  }
 0x22b   :  { %729 = vmax.xlane.f32.xlu0 %v728_v4  ;;  %v1985_v2 = vpop.eup %1349  ;;  %v418_v15 = vmul.f32 1.442695, %v406_v63  ;;  %194 = vmatpush.msra.mxu1 %v169_v9 }
 0x22c   :  { %v426_v5 = vsel %vm377_vm3, %v1985_v2, 0.0  ;;  %v1996_v62 = vpop.eup %1351  ;;  %v731_v36 = vsel %vm377_vm3, %v2004_v22, -inf  ;;  %vm672_vm11 = vcmp.gt.f32.partialorder %v664_v37, 0.0 }
 0x22d   :  { %427 = vadd.xlane.f32.xlu1 %v426_v5  ;;  %1353 = vpow2.f32 %v418_v15  ;;  %v432_v35 = vsel %vm377_vm3, %v1996_v62, 0.0 }
 0x230   :  { %v1994_v17 = vpop.xlane.xlu1 %397 }
 0x231   :  { %v408_v20 = vsub.f32 %v1850_v16, %v1994_v17  ;;  %vm456_vm2 = vcmp.gt.f32.partialorder %v1994_v17, -1e+29 }
 0x233   :  { %1086 = vmax.xlane.f32.xlu0 %v1085_v19  ;;  %v422_v23 = vmul.f32 1.442695, %v408_v20  ;;  %v2006_v24 = vpop.eup %1353  ;;  %v167_v20 = vld [vmem:[#allocation8] sm:$0xff] }
 0x234   :  { %v438_v16 = vsel %vm377_vm3, %v2006_v24, 0.0  ;;  %195 = vmatpush.msra.mxu1 %v167_v20 }
 0x235   :  { %433 = vadd.xlane.f32.xlu1 %v432_v35  ;;  %1355 = vpow2.f32 %v422_v23  ;;  %v680_v23 = vmul.f32 0.2, %v664_v37  ;;  %1311 = vmatmul.msk.f32.vlgmr.msra.gmra.mxu1 %vm142_vm0, %v1780_v8  ;;  %vm450_vm0 = vcmp.gt.f32.partialorder %v1964_v43, -1e+29 }
 0x23b   :  { %732 = vmax.xlane.f32.xlu0 %v731_v36  ;;  %v2019_v39 = vpop.eup %1355 }
 0x23c   :  { %v444_v60 = vsel %vm377_vm3, %v2019_v39, 0.0 }
 0x23d   :  { %439 = vadd.xlane.f32.xlu1 %v438_v16  ;;  %v688_v16 = vsel %vm672_vm11, %v664_v37, %v680_v23  ;;  %vm509_vm11 = vcmask 1047559  }
 0x23f   :  { %v2015_v29 = vpop.xlane.xlu2 %382 }
 0x240   :  { %v403_v32 = vsub.f32 %v1857_v25, %v2015_v29  ;;  %v695_v25 = vrot.slane %v1919_v41, 5  ;;  %vm451_vm12 = vcmp.gt.f32.partialorder %v2015_v29, -1e+29 }
 0x242   :  { %v412_v46 = vmul.f32 1.442695, %v403_v32  ;;  %v703_v6 = vperm.slane %v695_v25, 0 }
 0x243   :  { %1089 = vmax.xlane.f32.xlu0 %v1088_v0 }
 0x244   :  { %1357 = vpow2.f32 %v412_v46  ;;  %v2040_v63 = vadd.f32 %v703_v6, %v686_v40 }
 0x245   :  { %445 = vadd.xlane.f32.xlu1 %v444_v60 }
 0x246   :  { %v737_v15 = vsel %vm377_vm3, %v2040_v63, -inf }
 0x247   :  { %v2030_v57 = vpop.xlane.xlu2 %388 }
 0x248   :  { %v405_v59 = vsub.f32 %v1863_v33, %v2030_v57  ;;  %vm453_vm1 = vcmp.gt.f32.partialorder %v2030_v57, -1e+29 }
 0x24a   :  { %v2034_v1 = vpop.eup %1357  ;;  %v416_v4 = vmul.f32 1.442695, %v405_v59 }
 0x24b   :  { %735 = vmax.xlane.f32.xlu0 %v734_v49  ;;  %v429_v10 = vsel %vm377_vm3, %v2034_v1, 0.0 }
 0x24c   :  { %1359 = vpow2.f32 %v416_v4  ;;  %430 = vadd.xlane.f32.xlu2 %v429_v10 }
 0x24f   :  { %v2042_v5 = vpop.xlane.xlu2 %394 }
 0x250   :  { %v407_v33 = vsub.f32 %v1869_v52, %v2042_v5  ;;  %v697_v52 = vrot.slane %v1919_v41, 7  ;;  %vm455_vm7 = vcmp.gt.f32.partialorder %v2042_v5, -1e+29 }
 0x252   :  { %v2046_v14 = vpop.eup %1359  ;;  %v420_v56 = vmul.f32 1.442695, %v407_v33  ;;  %v705_v50 = vperm.slane %v697_v52, 0 }
 0x253   :  { %738 = vmax.xlane.f32.xlu0 %v737_v15  ;;  %v435_v19 = vsel %vm377_vm3, %v2046_v14, 0.0 }
 0x254   :  { %1361 = vpow2.f32 %v420_v56  ;;  %436 = vadd.xlane.f32.xlu2 %v435_v19  ;;  %v2067_v30 = vadd.f32 %v705_v50, %v688_v16 }
 0x256   :  { %v743_v8 = vsel %vm377_vm3, %v2067_v30, -inf }
 0x257   :  { %v2055_v35 = vpop.xlane.xlu2 %400 }
 0x258   :  { %v409_v36 = vsub.f32 %v1878_v61, %v2055_v35  ;;  %vm457_vm10 = vcmp.gt.f32.partialorder %v2055_v35, -1e+29 }
 0x25a   :  { %v2061_v27 = vpop.eup %1361  ;;  %v424_v28 = vmul.f32 1.442695, %v409_v36 }
 0x25b   :  { %741 = vmax.xlane.f32.xlu0 %v740_v48  ;;  %v441_v41 = vsel %vm377_vm3, %v2061_v27, 0.0 }
 0x25c   :  { %442 = vadd.xlane.f32.xlu2 %v441_v41  ;;  %1363 = vpow2.f32 %v424_v28 }
 0x262   :  { %v2071_v61 = vpop.eup %1363 }
 0x263   :  { %744 = vmax.xlane.f32.xlu0 %v743_v8  ;;  %v447_v32 = vsel %vm377_vm3, %v2071_v61, 0.0 }
 0x26b   :  { %448 = vadd.xlane.f32.xlu0 %v447_v32 }
 0x26d   :  { %v2075_v46 = vpop.xlane.xlu2 %1071  ;;  %v2081_v54 = vpop.xlane.xlu1 %1077 }
 0x26e   :  { %v1092_v0 = vsub.f32 %v1906_v34, %v2075_v46  ;;  %v2079_v51 = vpop.xlane.xlu0 %1068  ;;  %v1094_v42 = vsub.f32 %v1904_v21, %v2081_v54 }
 0x26f   :  { %v1091_v38 = vsub.f32 %v1908_v26, %v2079_v51 }
 0x270   :  { %v1101_v60 = vmul.f32 1.442695, %v1092_v0  ;;  %v1105_v59 = vmul.f32 1.442695, %v1094_v42 }
 0x271   :  { %v1099_v25 = vmul.f32 1.442695, %v1091_v38 }
 0x272   :  { %1365 = vpow2.f32 %v1101_v60 }
 0x273   :  { %1367 = vpow2.f32 %v1099_v25 }
 0x274   :  { %1369 = vpow2.f32 %v1105_v59 }
 0x275   :  { %v512_v4 = vpop.permute.xlu2 %511 }
 0x276   :  { %v2087_v49 = vpop.xlane.xlu0 %1074  ;;  %532 = vmatpush.msra.mxu3 %v512_v4 }
 0x277   :  { %v1093_v34 = vsub.f32 %v1923_v44, %v2087_v49 }
 0x278   :  { %568 = vmatpush.msrb.mxu3 %v1788_v11  ;;  %v2092_v6 = vpop.eup %1365 }
 0x279   :  { %v2094_v26 = vpop.eup %1367  ;;  %v1103_v10 = vmul.f32 1.442695, %v1093_v34  ;;  %v1118_v21 = vsel %vm377_vm3, %v2092_v6, 0.0 }
 0x27a   :  { %1119 = vadd.xlane.f32.xlu2 %v1118_v21  ;;  %v1115_v40 = vsel %vm377_vm3, %v2094_v26, 0.0  ;;  %v2102_v44 = vpop.eup %1369 }
 0x27b   :  { %1371 = vpow2.f32 %v1103_v10  ;;  %1116 = vadd.xlane.f32.xlu1 %v1115_v40  ;;  %v1124_v37 = vsel %vm377_vm3, %v2102_v44, 0.0 }
 0x27e   :  { %v2100_v33 = vpop.xlane.xlu0 %1080 }
 0x27f   :  { %v1095_v11 = vsub.f32 %v1936_v7, %v2100_v33 }
 0x281   :  { %v2106_v56 = vpop.eup %1371  ;;  %v1107_v15 = vmul.f32 1.442695, %v1095_v11 }
 0x282   :  { %v1121_v19 = vsel %vm377_vm3, %v2106_v56, 0.0 }
 0x283   :  { %1373 = vpow2.f32 %v1107_v15  ;;  %1122 = vadd.xlane.f32.xlu0 %v1121_v19  ;;  %1125 = vadd.xlane.f32.xlu1 %v1124_v37 }
 0x286   :  { %v2112_v9 = vpop.xlane.xlu0 %723 }
 0x287   :  { %v746_v20 = vsub.f32 %v1945_v18, %v2112_v9 }
 0x289   :  { %v2116_v52 = vpop.eup %1373  ;;  %v754_v7 = vmul.f32 1.442695, %v746_v20 }
 0x28a   :  { %v1127_v23 = vsel %vm377_vm3, %v2116_v52, 0.0 }
 0x28b   :  { %1375 = vpow2.f32 %v754_v7  ;;  %1128 = vadd.xlane.f32.xlu0 %v1127_v23 }
 0x28e   :  { %v2120_v36 = vpop.xlane.xlu0 %726 }
 0x28f   :  { %v747_v48 = vsub.f32 %v1954_v47, %v2120_v36 }
 0x291   :  { %v2124_v50 = vpop.eup %1375  ;;  %v756_v41 = vmul.f32 1.442695, %v747_v48 }
 0x292   :  { %v770_v16 = vsel %vm377_vm3, %v2124_v50, 0.0 }
 0x293   :  { %1377 = vpow2.f32 %v756_v41  ;;  %771 = vadd.xlane.f32.xlu1 %v770_v16 }
 0x296   :  { %v2128_v18 = vpop.xlane.xlu0 %1083 }
 0x297   :  { %v1096_v28 = vsub.f32 %v1961_v31, %v2128_v18 }
 0x299   :  { %v2132_v8 = vpop.eup %1377  ;;  %v1109_v32 = vmul.f32 1.442695, %v1096_v28 }
 0x29a   :  { %v773_v0 = vsel %vm377_vm3, %v2132_v8, 0.0 }
 0x29b   :  { %1379 = vpow2.f32 %v1109_v32  ;;  %774 = vadd.xlane.f32.xlu0 %v773_v0 }
 0x29e   :  { %v2136_v47 = vpop.xlane.xlu0 %729 }
 0x29f   :  { %v748_v38 = vsub.f32 %v1976_v58, %v2136_v47 }
 0x2a0   :  { %v428_v4 = vpop.xlane.xlu1 %427 }
 0x2a1   :  { %v2140_v60 = vpop.eup %1379  ;;  %v758_v25 = vmul.f32 1.442695, %v748_v38 }
 0x2a2   :  { %v1130_v42 = vsel %vm377_vm3, %v2140_v60, 0.0 }
 0x2a3   :  { %1381 = vpow2.f32 %v758_v25  ;;  %1131 = vadd.xlane.f32.xlu1 %v1130_v42 }
 0x2a6   :  { %v2144_v31 = vpop.xlane.xlu0 %1086 }
 0x2a7   :  { %v1097_v59 = vsub.f32 %v1991_v12, %v2144_v31 }
 0x2a8   :  { %v434_v19 = vpop.xlane.xlu1 %433 }
 0x2a9   :  { %v2148_v34 = vpop.eup %1381  ;;  %v1111_v10 = vmul.f32 1.442695, %v1097_v59 }
 0x2aa   :  { %v776_v58 = vsel %vm377_vm3, %v2148_v34, 0.0 }
 0x2ab   :  { %1383 = vpow2.f32 %v1111_v10  ;;  %777 = vadd.xlane.f32.xlu0 %v776_v58 }
 0x2ae   :  { %v2152_v21 = vpop.xlane.xlu0 %732 }
 0x2af   :  { %v749_v40 = vsub.f32 %v2004_v22, %v2152_v21 }
 0x2b0   :  { %v440_v48 = vpop.xlane.xlu1 %439 }
 0x2b1   :  { %v2156_v11 = vpop.eup %1383  ;;  %v760_v15 = vmul.f32 1.442695, %v749_v40 }
 0x2b2   :  { %v1133_v12 = vsel %vm377_vm3, %v2156_v11, 0.0 }
 0x2b3   :  { %1385 = vpow2.f32 %v760_v15  ;;  %1134 = vadd.xlane.f32.xlu1 %v1133_v12 }
 0x2b4   :  { %1387 = vrcp.f32 %v428_v4 }
 0x2b6   :  { %v2160_v37 = vpop.xlane.xlu0 %1089 }
 0x2b7   :  { %v1098_v20 = vsub.f32 %v1934_v3, %v2160_v37 }
 0x2b8   :  { %v446_v43 = vpop.xlane.xlu1 %445 }
 0x2b9   :  { %v2164_v7 = vpop.eup %1385  ;;  %v1113_v23 = vmul.f32 1.442695, %v1098_v20 }
 0x2ba   :  { %v779_v22 = vsel %vm377_vm3, %v2164_v7, 0.0  ;;  %v1388_v41 = vpop.eup %1387 }
 0x2bb   :  { %1389 = vpow2.f32 %v1113_v23  ;;  %780 = vadd.xlane.f32.xlu2 %v779_v22  ;;  %v466_v0 = vsel %vm450_vm0, %v1388_v41, 0.0  ;;  %vm514_vm0 = vcmask 64512  }
 0x2bc   :  { %1391 = vrcp.f32 %v434_v19  ;;  %v474_v59 = vmul.f32 %v1985_v2, %v466_v0 }
 0x2bd   :  { %1393 = vrcp.f32 %v440_v48 }
 0x2be   :  { %v2168_v16 = vpop.xlane.xlu0 %735  ;;  %v490_v19 = vrot.slane %v474_v59, 1 }
 0x2bf   :  { %v750_v28 = vsub.f32 %v2027_v55, %v2168_v16  ;;  %v431_v32 = vpop.xlane.xlu2 %430 }
 0x2c0   :  { %1395 = vrcp.f32 %v431_v32 }
 0x2c1   :  { %v2173_v3 = vpop.eup %1389  ;;  %v762_v38 = vmul.f32 1.442695, %v750_v28 }
 0x2c2   :  { %v1136_v25 = vsel %vm377_vm3, %v2173_v3, 0.0  ;;  %v1392_v42 = vpop.eup %1391 }
 0x2c3   :  { %1397 = vpow2.f32 %v762_v38  ;;  %1137 = vadd.xlane.f32.xlu0 %v1136_v25  ;;  %v1394_v4 = vpop.eup %1393  ;;  %v468_v29 = vsel %vm452_vm13, %v1392_v42, 0.0  ;;  %vm1141_vm13 = vcmp.gt.f32.partialorder %v2087_v49, -1e+29 }
 0x2c4   :  { %v470_v20 = vsel %vm454_vm15, %v1394_v4, 0.0  ;;  %v476_v53 = vmul.f32 %v1996_v62, %v468_v29  ;;  %vm1142_vm15 = vcmp.gt.f32.partialorder %v2081_v54, -1e+29 }
 0x2c6   :  { %v1396_v10 = vpop.eup %1395  ;;  %v2179_v55 = vpop.xlane.xlu0 %738  ;;  %v493_v42 = vrot.slane %v476_v53, 7 }
 0x2c7   :  { %v467_v58 = vsel %vm451_vm12, %v1396_v10, 0.0  ;;  %v751_v40 = vsub.f32 %v2040_v63, %v2179_v55  ;;  %v437_v15 = vpop.xlane.xlu2 %436  ;;  %vm1139_vm12 = vcmp.gt.f32.partialorder %v2079_v51, -1e+29 }
 0x2c8   :  { %v475_v2 = vmul.f32 %v2034_v1, %v467_v58  ;;  %1399 = vrcp.f32 %v437_v15  ;;  %v478_v1 = vmul.f32 %v2006_v24, %v470_v20  ;;  %v539_v24 = vrot.slane %v476_v53, 6 }
 0x2c9   :  { %v2186_v12 = vpop.eup %1397  ;;  %v764_v23 = vmul.f32 1.442695, %v751_v40  ;;  %1401 = vrcp.f32 %v446_v43 }
 0x2ca   :  { %v492_v45 = vsel %vm491_vm14, %v475_v2, %v490_v19  ;;  %v537_v22 = vrot.slane %v475_v2, 7  ;;  %v782_v48 = vsel %vm377_vm3, %v2186_v12, 0.0  ;;  %v499_v4 = vrot.slane %v478_v1, 5 }
 0x2cb   :  { %1403 = vpow2.f32 %v764_v23  ;;  %783 = vadd.xlane.f32.xlu1 %v782_v48  ;;  %v495_v40 = vsel %vm494_vm4, %v493_v42, %v492_v45 }
 0x2cc   :  { %v538_v63 = vsel %vm491_vm14, %v537_v22, %v474_v59 }
 0x2ce   :  { %v1400_v41 = vpop.eup %1399  ;;  %v2195_v28 = vpop.xlane.xlu0 %741 }
 0x2cf   :  { %v469_v32 = vsel %vm453_vm1, %v1400_v41, 0.0  ;;  %v752_v0 = vsub.f32 %v1938_v13, %v2195_v28  ;;  %v443_v38 = vpop.xlane.xlu2 %442  ;;  %v1402_v25 = vpop.eup %1401  ;;  %v543_v13 = vrot.slane %v478_v1, 4  ;;  %vm1143_vm1 = vcmp.gt.f32.partialorder %v2100_v33, -1e+29 }
 0x2d0   :  { %v477_v62 = vmul.f32 %v2046_v14, %v469_v32  ;;  %1405 = vrcp.f32 %v443_v38  ;;  %v540_v14 = vsel %vm494_vm4, %v539_v24, %v538_v63  ;;  %v472_v15 = vsel %vm456_vm2, %v1402_v25, 0.0  ;;  %v197_v38 = vpop.f32.mrf.mxu1 }
 0x2d1   :  { %v2201_v59 = vpop.eup %1403  ;;  %v766_v57 = vmul.f32 1.442695, %v752_v0  ;;  %v480_v45 = vmul.f32 %v2019_v39, %v472_v15  ;;  %v1449_v39 = vld [vmem:[%s2320_s5] sm:$0x3]  ;;  %s1693_s5 = smov 32  }
 0x2d2   :  { %v496_v10 = vrot.slane %v477_v62, 6  ;;  %v541_v43 = vrot.slane %v477_v62, 5  ;;  %v785_v58 = vsel %vm377_vm3, %v2201_v59, 0.0  ;;  %vm794_vm2 = vcmp.gt.f32.partialorder %v2112_v9, -1e+29 }
 0x2d3   :  { %1407 = vpow2.f32 %v766_v57  ;;  %786 = vadd.xlane.f32.xlu0 %v785_v58  ;;  %v505_v5 = vrot.slane %v480_v45, 3 }
 0x2d4   :  { %v498_v19 = vsel %vm497_vm5, %v496_v10, %v495_v40  ;;  %v542_v2 = vsel %vm497_vm5, %v541_v43, %v540_v14 }
 0x2d5   :  { %v501_v29 = vsel %vm500_vm6, %v499_v4, %v498_v19  ;;  %v544_v20 = vsel %vm500_vm6, %v543_v13, %v542_v2 }
 0x2d6   :  { %v1406_v23 = vpop.eup %1405  ;;  %v2214_v22 = vpop.xlane.xlu0 %744 }
 0x2d7   :  { %v471_v48 = vsel %vm455_vm7, %v1406_v23, 0.0  ;;  %v753_v17 = vsub.f32 %v2067_v30, %v2214_v22  ;;  %v173_v30 = vperm.slane %v1449_v39, 0  ;;  %vm795_vm7 = vcmp.gt.f32.partialorder %v2120_v36, -1e+29 }
 0x2d8   :  { %v479_v53 = vmul.f32 %v2061_v27, %v471_v48  ;;  %v547_v27 = vrot.slane %v480_v45, 2 }
 0x2d9   :  { %v2220_v63 = vpop.eup %1407  ;;  %v768_v1 = vmul.f32 1.442695, %v753_v17  ;;  %v198_v24 = vadd.f32 %v197_v38, %v173_v30 }
 0x2da   :  { %v502_v41 = vrot.slane %v479_v53, 4  ;;  %v545_v32 = vrot.slane %v479_v53, 3  ;;  %v788_v0 = vsel %vm377_vm3, %v2220_v63, 0.0 }
 0x2db   :  { %1409 = vpow2.f32 %v768_v1  ;;  %789 = vadd.xlane.f32.xlu1 %v788_v0  ;;  %905 = vmatpush.msrb.mxu1 %v198_v24 }
 0x2dc   :  { %v504_v25 = vsel %vm503_vm8, %v502_v41, %v501_v29  ;;  %v546_v42 = vsel %vm503_vm8, %v545_v32, %v544_v20  ;;  %849 = vrot.lane.b32.xlu2 %v198_v24, %s1692_s30 }
 0x2dd   :  { %v507_v62 = vsel %vm506_vm9, %v505_v5, %v504_v25  ;;  %v548_v4 = vsel %vm506_vm9, %v547_v27, %v546_v42 }
 0x2de   :  { %v449_v57 = vpop.xlane.xlu0 %448 }
 0x2df   :  { %1411 = vrcp.f32 %v449_v57 }
 0x2e1   :  { %v2232_v10 = vpop.eup %1409 }
 0x2e2   :  { %v791_v43 = vsel %vm377_vm3, %v2232_v10, 0.0  ;;  %vm1140_vm3 = vcmp.gt.f32.partialorder %v2075_v46, -1e+29 }
 0x2e3   :  { %792 = vadd.xlane.f32.xlu0 %v791_v43 }
 0x2e5   :  { %v1412_v58 = vpop.eup %1411 }
 0x2e6   :  { %v473_v13 = vsel %vm457_vm10, %v1412_v58, 0.0  ;;  %vm1144_vm10 = vcmp.gt.f32.partialorder %v2128_v18, -1e+29 }
 0x2e7   :  { %v481_v40 = vmul.f32 %v2071_v61, %v473_v13 }
 0x2e9   :  { %v508_v14 = vrot.slane %v481_v40, 2  ;;  %v549_v15 = vrot.slane %v481_v40, 1 }
 0x2eb   :  { %v510_v19 = vsel %vm509_vm11, %v508_v14, %v507_v62  ;;  %v550_v2 = vsel %vm509_vm11, %v549_v15, %v548_v4 }
 0x2ec   :  { %1313 = vmatmul.msk.f32.vlgmr.msra.gmra.mxu3 %vm514_vm0, %v510_v19 }
 0x2ed   :  { %v1120_v29 = vpop.xlane.xlu2 %1119 }
 0x2ee   :  { %1413 = vrcp.f32 %v1120_v29  ;;  %v1117_v20 = vpop.xlane.xlu1 %1116 }
 0x2ef   :  { %1415 = vrcp.f32 %v1117_v20 }
 0x2f4   :  { %v1414_v23 = vpop.eup %1413  ;;  %1193 = vrot.lane.b32.xlu1 %v198_v24, %s1693_s5  ;;  %1314 = vmatmul.msk.f32.vlgmr.msrb.gmra.mxu3 %vm514_vm0, %v550_v2 }
 0x2f5   :  { %v1416_v35 = vpop.eup %1415  ;;  %v1156_v61 = vsel %vm1140_vm3, %v1414_v23, 0.0  ;;  %vm796_vm3 = vcmp.gt.f32.partialorder %v2136_v47, -1e+29 }
 0x2f6   :  { %v1164_v45 = vmul.f32 %v2092_v6, %v1156_v61  ;;  %v1155_v48 = vsel %vm1139_vm12, %v1416_v35, 0.0  ;;  %v1123_v17 = vpop.xlane.xlu0 %1122  ;;  %v1126_v53 = vpop.xlane.xlu1 %1125  ;;  %vm797_vm12 = vcmp.gt.f32.partialorder %v2152_v21, -1e+29 }
 0x2f7   :  { %v1163_v1 = vmul.f32 %v2094_v26, %v1155_v48  ;;  %1417 = vrcp.f32 %v1123_v17  ;;  %1232 = vrot.lane.b32.xlu0 %v198_v24, %s1689_s28 }
 0x2f8   :  { %v1218_v41 = vrot.slane %v1164_v45, 7  ;;  %1419 = vrcp.f32 %v1126_v53 }
 0x2f9   :  { %v1179_v46 = vrot.slane %v1163_v1, 1 }
 0x2fa   :  { %v1219_v32 = vsel %vm491_vm14, %v1218_v41, %v1163_v1 }
 0x2fb   :  { %v1180_v0 = vsel %vm491_vm14, %v1164_v45, %v1179_v46 }
 0x2fd   :  { %v1418_v5 = vpop.eup %1417 }
 0x2fe   :  { %v1420_v51 = vpop.eup %1419  ;;  %v1157_v6 = vsel %vm1141_vm13, %v1418_v5, 0.0  ;;  %v1129_v39 = vpop.xlane.xlu0 %1128  ;;  %vm798_vm13 = vcmp.gt.f32.partialorder %v2168_v16, -1e+29 }
 0x2ff   :  { %v1165_v26 = vmul.f32 %v2106_v56, %v1157_v6  ;;  %v1158_v30 = vsel %vm1142_vm15, %v1420_v51, 0.0  ;;  %1421 = vrcp.f32 %v1129_v39  ;;  %vm800_vm15 = vcmp.gt.f32.partialorder %v2195_v28, -1e+29 }
 0x300   :  { %v1166_v38 = vmul.f32 %v2102_v44, %v1158_v30 }
 0x301   :  { %v1181_v27 = vrot.slane %v1165_v26, 7  ;;  %v1220_v25 = vrot.slane %v1165_v26, 6 }
 0x302   :  { %v1183_v42 = vrot.slane %v1166_v38, 6  ;;  %v1222_v62 = vrot.slane %v1166_v38, 5 }
 0x303   :  { %v1221_v24 = vsel %vm494_vm4, %v1220_v25, %v1219_v32  ;;  %v1182_v4 = vsel %vm494_vm4, %v1181_v27, %v1180_v0 }
 0x304   :  { %v1184_v49 = vsel %vm497_vm5, %v1183_v42, %v1182_v4  ;;  %v1223_v54 = vsel %vm497_vm5, %v1222_v62, %v1221_v24 }
 0x305   :  { %v1422_v57 = vpop.eup %1421 }
 0x306   :  { %v1159_v56 = vsel %vm1143_vm1, %v1422_v57, 0.0  ;;  %v772_v43 = vpop.xlane.xlu1 %771 }
 0x307   :  { %v1167_v58 = vmul.f32 %v2116_v52, %v1159_v56  ;;  %1423 = vrcp.f32 %v772_v43 }
 0x309   :  { %v1185_v44 = vrot.slane %v1167_v58, 5  ;;  %v1224_v13 = vrot.slane %v1167_v58, 4 }
 0x30b   :  { %v1186_v40 = vsel %vm500_vm6, %v1185_v44, %v1184_v49  ;;  %v1225_v14 = vsel %vm500_vm6, %v1224_v13, %v1223_v54 }
 0x30d   :  { %v1424_v15 = vpop.eup %1423 }
 0x30e   :  { %v775_v19 = vpop.xlane.xlu0 %774  ;;  %v810_v2 = vsel %vm794_vm2, %v1424_v15, 0.0 }
 0x30f   :  { %1425 = vrcp.f32 %v775_v19  ;;  %v818_v29 = vmul.f32 %v2124_v50, %v810_v2 }
 0x311   :  { %v834_v23 = vrot.slane %v818_v29, 1 }
 0x315   :  { %v1426_v33 = vpop.eup %1425 }
 0x316   :  { %v811_v20 = vsel %vm795_vm7, %v1426_v33, 0.0  ;;  %v1132_v52 = vpop.xlane.xlu1 %1131 }
 0x317   :  { %v819_v35 = vmul.f32 %v2132_v8, %v811_v20  ;;  %1427 = vrcp.f32 %v1132_v52 }
 0x319   :  { %v835_v61 = vsel %vm491_vm14, %v819_v35, %v834_v23  ;;  %v874_v45 = vrot.slane %v819_v35, 7 }
 0x31b   :  { %v875_v48 = vsel %vm491_vm14, %v874_v45, %v818_v29  ;;  %vm1145_vm14 = vcmp.gt.f32.partialorder %v2144_v31, -1e+29 }
 0x31d   :  { %v1428_v17 = vpop.eup %1427 }
 0x31e   :  { %v1160_v9 = vsel %vm1144_vm10, %v1428_v17, 0.0  ;;  %v778_v53 = vpop.xlane.xlu0 %777 }
 0x31f   :  { %v1168_v50 = vmul.f32 %v2140_v60, %v1160_v9  ;;  %1429 = vrcp.f32 %v778_v53 }
 0x321   :  { %v1187_v36 = vrot.slane %v1168_v50, 4  ;;  %v1226_v1 = vrot.slane %v1168_v50, 3 }
 0x323   :  { %v1188_v41 = vsel %vm503_vm8, %v1187_v36, %v1186_v40  ;;  %v1227_v8 = vsel %vm503_vm8, %v1226_v1, %v1225_v14 }
 0x325   :  { %v1430_v46 = vpop.eup %1429 }
 0x326   :  { %v812_v32 = vsel %vm796_vm3, %v1430_v46, 0.0  ;;  %v1135_v0 = vpop.xlane.xlu1 %1134 }
 0x327   :  { %v820_v5 = vmul.f32 %v2148_v34, %v812_v32  ;;  %1431 = vrcp.f32 %v1135_v0 }
 0x329   :  { %v836_v18 = vrot.slane %v820_v5, 7  ;;  %v876_v51 = vrot.slane %v820_v5, 6 }
 0x32b   :  { %v837_v6 = vsel %vm494_vm4, %v836_v18, %v835_v61  ;;  %v877_v60 = vsel %vm494_vm4, %v876_v51, %v875_v48  ;;  %vm1146_vm4 = vcmp.gt.f32.partialorder %v2160_v37, -1e+29 }
 0x32d   :  { %v1432_v39 = vpop.eup %1431 }
 0x32e   :  { %v1161_v26 = vsel %vm1145_vm14, %v1432_v39, 0.0  ;;  %v781_v30 = vpop.xlane.xlu2 %780 }
 0x32f   :  { %v1169_v38 = vmul.f32 %v2156_v11, %v1161_v26  ;;  %1433 = vrcp.f32 %v781_v30 }
 0x331   :  { %v1228_v47 = vrot.slane %v1169_v38, 2  ;;  %v1189_v27 = vrot.slane %v1169_v38, 3 }
 0x333   :  { %v1190_v25 = vsel %vm506_vm9, %v1189_v27, %v1188_v41  ;;  %v1229_v34 = vsel %vm506_vm9, %v1228_v47, %v1227_v8 }
 0x335   :  { %v1434_v42 = vpop.eup %1433 }
 0x336   :  { %v813_v62 = vsel %vm797_vm12, %v1434_v42, 0.0  ;;  %v1138_v24 = vpop.xlane.xlu0 %1137  ;;  %v850_v54 = vpop.permute.xlu2 %849 }
 0x337   :  { %v821_v4 = vmul.f32 %v2164_v7, %v813_v62  ;;  %1435 = vrcp.f32 %v1138_v24  ;;  %869 = vmatpush.msrb.mxu0 %v850_v54 }
 0x339   :  { %v838_v31 = vrot.slane %v821_v4, 6  ;;  %v878_v49 = vrot.slane %v821_v4, 5 }
 0x33b   :  { %v839_v11 = vsel %vm497_vm5, %v838_v31, %v837_v6  ;;  %v879_v57 = vsel %vm497_vm5, %v878_v49, %v877_v60  ;;  %vm799_vm5 = vcmp.gt.f32.partialorder %v2179_v55, -1e+29 }
 0x33d   :  { %v1436_v56 = vpop.eup %1435 }
 0x33e   :  { %v1162_v43 = vsel %vm1146_vm4, %v1436_v56, 0.0  ;;  %v784_v58 = vpop.xlane.xlu1 %783 }
 0x33f   :  { %v1170_v21 = vmul.f32 %v2173_v3, %v1162_v43  ;;  %1437 = vrcp.f32 %v784_v58 }
 0x341   :  { %v1191_v44 = vrot.slane %v1170_v21, 2  ;;  %v1230_v13 = vrot.slane %v1170_v21, 1 }
 0x343   :  { %v1192_v7 = vsel %vm509_vm11, %v1191_v44, %v1190_v25  ;;  %v1231_v40 = vsel %vm509_vm11, %v1230_v13, %v1229_v34 }
 0x345   :  { %v1438_v14 = vpop.eup %1437 }
 0x346   :  { %v814_v15 = vsel %vm798_vm13, %v1438_v14, 0.0  ;;  %v787_v19 = vpop.xlane.xlu0 %786 }
 0x347   :  { %v822_v2 = vmul.f32 %v2186_v12, %v814_v15  ;;  %1439 = vrcp.f32 %v787_v19 }
 0x349   :  { %v840_v37 = vrot.slane %v822_v2, 5  ;;  %v880_v29 = vrot.slane %v822_v2, 4 }
 0x34b   :  { %v841_v33 = vsel %vm500_vm6, %v840_v37, %v839_v11  ;;  %v881_v3 = vsel %vm500_vm6, %v880_v29, %v879_v57  ;;  %vm801_vm6 = vcmp.gt.f32.partialorder %v2214_v22, -1e+29 }
 0x34d   :  { %v1440_v20 = vpop.eup %1439 }
 0x34e   :  { %v815_v52 = vsel %vm799_vm5, %v1440_v20, 0.0  ;;  %v790_v23 = vpop.xlane.xlu1 %789 }
 0x34f   :  { %v823_v35 = vmul.f32 %v2201_v59, %v815_v52  ;;  %1441 = vrcp.f32 %v790_v23 }
 0x351   :  { %v842_v16 = vrot.slane %v823_v35, 4  ;;  %v882_v61 = vrot.slane %v823_v35, 3 }
 0x353   :  { %v843_v45 = vsel %vm503_vm8, %v842_v16, %v841_v33  ;;  %v883_v12 = vsel %vm503_vm8, %v882_v61, %v881_v3  ;;  %vm1264_vm8 = vcmask 261120  }
 0x355   :  { %v1442_v48 = vpop.eup %1441 }
 0x356   :  { %v816_v17 = vsel %vm800_vm15, %v1442_v48, 0.0  ;;  %v793_v9 = vpop.xlane.xlu0 %792 }
 0x357   :  { %v824_v53 = vmul.f32 %v2220_v63, %v816_v17  ;;  %1443 = vrcp.f32 %v793_v9 }
 0x359   :  { %v844_v55 = vrot.slane %v824_v53, 3  ;;  %v884_v50 = vrot.slane %v824_v53, 2 }
 0x35b   :  { %v845_v36 = vsel %vm506_vm9, %v844_v55, %v843_v45  ;;  %v885_v59 = vsel %vm506_vm9, %v884_v50, %v883_v12 }
 0x35d   :  { %v1444_v1 = vpop.eup %1443 }
 0x35e   :  { %v817_v41 = vsel %vm801_vm6, %v1444_v1, 0.0 }
 0x35f   :  { %v825_v8 = vmul.f32 %v2232_v10, %v817_v41 }
 0x361   :  { %v846_v46 = vrot.slane %v825_v8, 2  ;;  %v886_v32 = vrot.slane %v825_v8, 1 }
 0x363   :  { %v847_v28 = vsel %vm509_vm11, %v846_v46, %v845_v36  ;;  %v887_v0 = vsel %vm509_vm11, %v886_v32, %v885_v59 }
 0x364   :  { %1315 = vmatmul.msk.f32.vlgmr.msrb.gmra.mxu0 %vm514_vm0, %v847_v28  ;;  %1316 = vmatmul.msk.f32.vlgmr.msrb.gmra.mxu1 %vm514_vm0, %v887_v0 }
 0x366   :  { %v1194_v63 = vpop.permute.xlu1 %1193 }
 0x367   :  { %1213 = vmatpush.msrb.mxu2 %v1194_v63 }
 0x368   :  { %1317 = vmatmul.msk.f32.vlgmr.msrb.gmra.mxu2 %vm514_vm0, %v1192_v7 }
 0x369   :  { %v1233_v5 = vpop.permute.xlu0 %1232 }
 0x36a   :  { %1252 = vmatpush.msra.mxu3 %v1233_v5 }
 0x36b   :  { %1318 = vmatmul.msk.f32.vlgmr.msra.gmra.mxu3 %vm514_vm0, %v1231_v40 }
 0x36f   :  { %v534_v22 = vpop.f32.mrf.mxu3 }
 0x377   :  { %v570_v10 = vpop.f32.mrf.mxu3 }
 0x378   :  { %v571_v6 = vadd.f32 %v570_v10, %v534_v22 }
 0x3e1   :  { %v871_v18 = vpop.f32.mrf.mxu0  ;;  %v907_v51 = vpop.f32.mrf.mxu1 }
 0x3e2   :  { %v908_v60 = vadd.f32 %v907_v51, %v871_v18 }
 0x3e4   :  { %v910_v39 = vadd.f32 %v908_v60, %v571_v6 }
 0x3e6   :  { %v1266_v26 = vmul.f32 0.25, %v910_v39 }
 0x3e8   :  { %v1268_v30 = vmin.f32 %v1266_v26, 0.0  ;;  %vm1267_vm9 = vcmp.gt.f32.partialorder %v1266_v26, 0.0 }
 0x3ea   :  { %v1269_v38 = vmul.f32 1.442695, %v1268_v30 }
 0x3eb   :  { %v1215_v47 = vpop.f32.mrf.mxu2 }
 0x3ec   :  { %1445 = vpow2.f32 %v1269_v38 }
 0x3ee   :  { %v1254_v27 = vpop.f32.mrf.mxu3 }
 0x3ef   :  { %v1255_v25 = vadd.f32 %v1254_v27, %v1215_v47 }
 0x3f1   :  { %v1257_v34 = vmul.f32 0.5, %v1255_v25 }
 0x3f2   :  { %v1446_v42 = vpop.eup %1445 }
 0x3f3   :  { %v1259_v62 = vmin.f32 %v1257_v34, 0.0  ;;  %v1320_v24 = vadd.f32 -1.0, %v1446_v42  ;;  %vm1258_vm11 = vcmp.gt.f32.partialorder %v1257_v34, 0.0 }
 0x3f5   :  { %v1260_v4 = vmul.f32 1.442695, %v1259_v62  ;;  %v1272_v31 = vsel %vm1267_vm9, %v1266_v26, %v1320_v24 }
 0x3f6   :  { %1273 = vst.msk [vmem:[#allocation15] sm:$0xff] %vm1264_vm8, %v1272_v31 }
 0x3f7   :  { %1447 = vpow2.f32 %v1260_v4  ;;  %1295 = dma.vmem_to_hbm [thread:$0]  %s1291_s13, 128, %s1293_s16, [#allocation16]  }
 0x3fd   :  { %v1448_v49 = vpop.eup %1447 }
 0x3fe   :  { %v1319_v54 = vadd.f32 -1.0, %v1448_v49 }
 0x400   :  { %v1263_v11 = vsel %vm1258_vm11, %v1257_v34, %v1319_v54 }
 0x401   :  { %1265 = vst.msk [vmem:[#allocation14] sm:$0xff] %vm1264_vm8, %v1263_v11 }
 0x402   :  { %1284 = dma.vmem_to_hbm [thread:$0]  %s1280_s7, 128, %s1282_s20, [#allocation4]  }
 0x403   :  { %1674 = dma.done.wait [#allocation4], 128  }
 0x404   :  { %1675 = vsyncadd [#allocation4], 4294967168 }
 0x405   :  { %1676 = dma.done.wait [#allocation16], 128  }
 0x406   :  { %1677 = vsyncadd [#allocation16], 4294967168 }
 0x407   :  { %1304 = vsyncpa [#allocation3], 1 }
 0x408   :  { %1305 = vsyncpa [#allocation6], 1 }
 0x409   :  { %1306 = vsyncpa [#allocation9], 1 }
 0x40a   :  { %1307 = vsyncpa [#allocation12], 1 }
 0x40b   :  { %1308 = vsyncpa [#allocation4], 1 }
 0x40c   :  { %1309 = vsyncpa [#allocation16], 1 }

</bundles_post_ra>
